<compile_context>
chip_gen: v7x
topology: tpu7x:2x2x1
jax: 0.10.0
libtpu: 0.0.40
codegen_flags: <defaults>
</compile_context>

<pallas_src>
import functools

import jax
import jax.numpy as jnp
from jax import lax
from jax.experimental import pallas as pl
from jax.experimental.pallas import tpu as pltpu


def _round_up(x, m):
    return (x + m - 1) // m * m


_VMEM_CAP_CACHE = []


def _vmem_capacity_bytes():
    """Best-effort per-core VMEM capacity; conservative 64 MiB (v7x) fallback."""
    if _VMEM_CAP_CACHE:
        return _VMEM_CAP_CACHE[0]
    cap = 64 * 2**20
    try:
        info = pltpu.get_tpu_info()
        c = getattr(info, "vmem_capacity_bytes", None)
        if c:
            cap = int(c)
    except Exception:
        pass
    _VMEM_CAP_CACHE.append(cap)
    return cap


# ----------------------------------------------------------------------------
# Fused (optional input BN+ReLU) -> tiled matmul -> (optional output BN+ReLU)
# ----------------------------------------------------------------------------
def _conv_mm_kernel(*refs, in_bn, in_relu, out_bn, out_relu):
    it = iter(refs)
    a_ref = next(it)
    b_ref = next(it)
    isc_ref = ish_ref = osc_ref = osh_ref = None
    if in_bn:
        isc_ref = next(it)
        ish_ref = next(it)
    if out_bn:
        osc_ref = next(it)
        osh_ref = next(it)
    o_ref = next(it)
    acc_ref = next(it)

    k = pl.program_id(2)

    @pl.when(k == 0)
    def _():
        acc_ref[...] = jnp.zeros_like(acc_ref)

    a = a_ref[...]
    if in_bn:
        # TODO(synk): with grid (i, j, k) this re-applies the input BN per j
        # (N) step; irrelevant here (N_pad//tn == 1) but a VMEM-cached A tile
        # would avoid it for real-size transition convs.
        a = a * isc_ref[...] + ish_ref[...]          # bf16 VPU math
        if in_relu:
            a = jnp.maximum(a, 0)
        a = a.astype(b_ref.dtype)
    acc_ref[...] += jnp.dot(a, b_ref[...], preferred_element_type=jnp.float32)

    @pl.when(k == pl.num_programs(2) - 1)
    def _():
        y = acc_ref[...]
        if out_bn:
            y = y * osc_ref[...] + osh_ref[...]      # f32 on the accumulator
            if out_relu:
                y = jnp.maximum(y, 0.0)
        o_ref[...] = y.astype(o_ref.dtype)           # bf16 writeback


def fused_matmul_bn(a, b, in_bn=None, out_bn=None, out_dtype=jnp.bfloat16):
    """a: (M, K), b: (K, N).  Optional fused per-K-column input BN(+ReLU) and
    per-N-column output BN(+ReLU); in_bn/out_bn = (scale, shift, relu) or None.
    bf16 operands, f32 accumulation, bf16 output by default."""
    M, K = a.shape
    _, N = b.shape

    vmem_cap = _vmem_capacity_bytes()
    big_vmem = vmem_cap >= 96 * 2**20          # v5e/v6e: 128 MiB, v7x: 64 MiB
    tm_cap = 1024 if big_vmem else 512
    tn_cap = 512 if big_vmem else 256
    limit_cap = (96 if big_vmem else 48) * 2**20

    K_r = _round_up(K, 128)
    N_r = _round_up(N, 128)
    tk = min(256, K_r)                         # >=2 k-steps for long K (overlap DMA/MXU)
    tn = min(tn_cap, N_r)                      # prefer >=256 for the 256-wide MXU
    tm = min(tm_cap, _round_up(M, 16))         # bf16 packs 16 sublanes/vreg

    # Guarantee >=2 parallel grid steps so v7x's two TensorCores both get work;
    # negligible cost on single-TC chips.
    if (_round_up(M, tm) // tm) == 1 and (N_r // tn) == 1 and M > 16:
        tm = _round_up((M + 1) // 2, 16)

    M_pad, K_pad, N_pad = _round_up(M, tm), _round_up(K, tk), _round_up(N, tn)

    a_p = jnp.pad(a.astype(jnp.bfloat16), ((0, M_pad - M), (0, K_pad - K)))
    b_p = jnp.pad(b.astype(jnp.bfloat16), ((0, K_pad - K), (0, N_pad - N)))

    operands = [a_p, b_p]
    in_specs = [pl.BlockSpec((tm, tk), lambda i, j, k: (i, k)),
                pl.BlockSpec((tk, tn), lambda i, j, k: (k, j))]

    in_relu = out_relu = False
    if in_bn is not None:
        isc, ish, in_relu = in_bn
        isc_p = jnp.pad(isc.reshape(1, K).astype(jnp.bfloat16),
                        ((0, 0), (0, K_pad - K)))
        ish_p = jnp.pad(ish.reshape(1, K).astype(jnp.bfloat16),
                        ((0, 0), (0, K_pad - K)))
        operands += [isc_p, ish_p]
        in_specs += [pl.BlockSpec((1, tk), lambda i, j, k: (0, k)),
                     pl.BlockSpec((1, tk), lambda i, j, k: (0, k))]
    if out_bn is not None:
        osc, osh, out_relu = out_bn
        osc_p = jnp.pad(osc.reshape(1, N).astype(jnp.float32),
                        ((0, 0), (0, N_pad - N)))
        osh_p = jnp.pad(osh.reshape(1, N).astype(jnp.float32),
                        ((0, 0), (0, N_pad - N)))
        operands += [osc_p, osh_p]
        in_specs += [pl.BlockSpec((1, tn), lambda i, j, k: (0, j)),
                     pl.BlockSpec((1, tn), lambda i, j, k: (0, j))]

    kernel = functools.partial(
        _conv_mm_kernel,
        in_bn=in_bn is not None, in_relu=in_relu,
        out_bn=out_bn is not None, out_relu=out_relu)

    out_bytes = jnp.dtype(out_dtype).itemsize
    vmem_need = (2 * (tm * tk * 2 + tk * tn * 2)     # double-buffered A/B (bf16)
                 + 2 * tm * tn * out_bytes           # double-buffered output
                 + tm * tn * 4                       # f32 accumulator
                 + 4 * (tk + tn) * 4 * 2)            # BN vectors
    vmem_limit = int(min(limit_cap, max(32 * 2**20, 2 * vmem_need)))

    cost = pl.CostEstimate(
        flops=2 * M_pad * N_pad * K_pad,
        transcendentals=0,
        bytes_accessed=(M_pad * K_pad * 2 + K_pad * N_pad * 2
                        + M_pad * N_pad * out_bytes))

    grid = (M_pad // tm, N_pad // tn, K_pad // tk)

    out = pl.pallas_call(
        kernel,
        out_shape=jax.ShapeDtypeStruct((M_pad, N_pad), out_dtype),
        grid_spec=pltpu.PrefetchScalarGridSpec(
            num_scalar_prefetch=0,
            grid=grid,
            in_specs=in_specs,
            out_specs=pl.BlockSpec((tm, tn), lambda i, j, k: (i, j)),
            scratch_shapes=[pltpu.VMEM((tm, tn), jnp.float32)]),
        compiler_params=pltpu.CompilerParams(
            dimension_semantics=("parallel", "parallel", "arbitrary"),
            vmem_limit_bytes=vmem_limit),
        cost_estimate=cost,
    )(*operands)
    return out[:M, :N]


# ----------------------------------------------------------------------------
# Fused head: norm5 BN + ReLU + adaptive_avg_pool2d((1,1)) + flatten
# ----------------------------------------------------------------------------
def _head_kernel(x_ref, sc_ref, sh_ref, o_ref, *, inv_hw):
    y = x_ref[...].astype(jnp.float32) * sc_ref[...] + sh_ref[...]
    y = jnp.maximum(y, 0.0)
    o_ref[...] = jnp.sum(y, axis=1, keepdims=True) * inv_hw


def pallas_head(x, scale, shift):
    """Fused norm5 BN + F.relu + global average pool + flatten(1); bf16 input."""
    N, H, W, C = x.shape
    HW = H * W
    C_pad = _round_up(C, 128)
    xr = jnp.pad(x.reshape(N, HW, C).astype(jnp.bfloat16),
                 ((0, 0), (0, 0), (0, C_pad - C)))
    sc = jnp.pad(scale.reshape(1, 1, C).astype(jnp.float32),
                 ((0, 0), (0, 0), (0, C_pad - C)))
    sh = jnp.pad(shift.reshape(1, 1, C).astype(jnp.float32),
                 ((0, 0), (0, 0), (0, C_pad - C)))
    out = pl.pallas_call(
        functools.partial(_head_kernel, inv_hw=1.0 / HW),
        out_shape=jax.ShapeDtypeStruct((N, 1, C_pad), jnp.float32),
        grid_spec=pltpu.PrefetchScalarGridSpec(
            num_scalar_prefetch=0,
            grid=(N,),
            in_specs=[
                pl.BlockSpec((1, HW, C_pad), lambda n: (n, 0, 0)),
                pl.BlockSpec((1, 1, C_pad), lambda n: (0, 0, 0)),
                pl.BlockSpec((1, 1, C_pad), lambda n: (0, 0, 0)),
            ],
            out_specs=pl.BlockSpec((1, 1, C_pad), lambda n: (n, 0, 0))),
        compiler_params=pltpu.CompilerParams(
            dimension_semantics=("parallel",)),
    )(xr, sc, sh)
    return out.reshape(N, C_pad)[:, :C]


# ----------------------------------------------------------------------------
# Layer helpers (im2col glue in plain JAX, compute in Pallas)
# ----------------------------------------------------------------------------
def fold_bn(p, eps=1e-5):
    scale = p["gamma"] / jnp.sqrt(p["var"] + eps)
    shift = p["beta"] - p["mean"] * scale
    return scale, shift


def conv2d(x, w, stride, padding, in_bn=None, out_bn=None):
    """x: (N,H,W,Cin) NHWC bf16, w: (KH,KW,Cin,Cout) f32.
    in_bn = BN(+ReLU) applied to the conv INPUT (fused in-kernel; requires
    padding == 0).  out_bn = BN(+ReLU) applied to the conv OUTPUT (fused into
    the matmul writeback).  Returns bf16 NHWC."""
    N, H, W, Cin = x.shape
    KH, KW, _, Cout = w.shape
    if in_bn is not None:
        assert padding == 0, "input-BN fusion requires an un-padded conv"

    if KH == 1 and KW == 1 and stride == 1 and padding == 0:
        patches = x
        OH, OW = H, W
    else:
        # TODO(synk): im2col still materializes the KH*KW-inflated patches
        # tensor in HBM (bf16 now, half the previous traffic); folding the taps
        # into the matmul K grid axis would cut A-side reads by ~KH*KW.
        xp = jnp.pad(x, ((0, 0), (padding, padding), (padding, padding), (0, 0)))
        OH = (H + 2 * padding - KH) // stride + 1
        OW = (W + 2 * padding - KW) // stride + 1
        cols = []
        for dy in range(KH):
            for dx in range(KW):
                cols.append(xp[:,
                               dy: dy + stride * (OH - 1) + 1: stride,
                               dx: dx + stride * (OW - 1) + 1: stride,
                               :])
        patches = jnp.concatenate(cols, axis=-1)      # (N, OH, OW, KH*KW*Cin)

    a = patches.reshape(N * OH * OW, KH * KW * Cin)
    b = w.reshape(KH * KW * Cin, Cout)                # matches (kh, kw, cin) order

    in_bn_k = None
    if in_bn is not None:
        isc, ish, irelu = in_bn
        in_bn_k = (jnp.tile(isc, KH * KW), jnp.tile(ish, KH * KW), irelu)

    out = fused_matmul_bn(a, b, in_bn=in_bn_k, out_bn=out_bn)
    return out.reshape(N, OH, OW, Cout)


def maxpool_3x3_s2_p1(x):
    # TODO(synk): small-window max-pool left to XLA reduce_window (not a hot path).
    return lax.reduce_window(
        x, jnp.array(-jnp.inf, x.dtype), lax.max,
        window_dimensions=(1, 3, 3, 1),
        window_strides=(1, 2, 2, 1),
        padding=((0, 0), (1, 1), (1, 1), (0, 0)))


def avgpool_2x2_s2(x):
    # floor-mode 2x2 / stride-2 average pool (matches torch avg_pool2d defaults).
    N, H, W, C = x.shape
    Hc, Wc = (H // 2) * 2, (W // 2) * 2
    xc = x[:, :Hc, :Wc, :]
    return xc.reshape(N, Hc // 2, 2, Wc // 2, 2, C).mean(axis=(2, 4)).astype(x.dtype)


# ----------------------------------------------------------------------------
# DenseNet-style feature extractor (scaled down, see TODO above)
# ----------------------------------------------------------------------------
GROWTH = 8
BN_SIZE = 4
INIT_FEATURES = 16
BLOCK_CONFIG = (2, 2)


def init_params(key):
    keys = iter(jax.random.split(key, 256))

    def conv_w(kh, kw, cin, cout):
        fan_in = kh * kw * cin
        return (jax.random.normal(next(keys), (kh, kw, cin, cout), jnp.float32)
                * (2.0 / fan_in) ** 0.5)

    def bn_p(c):
        return dict(
            gamma=jax.random.uniform(next(keys), (c,), jnp.float32, 0.5, 1.5),
            beta=0.1 * jax.random.normal(next(keys), (c,), jnp.float32),
            mean=0.1 * jax.random.normal(next(keys), (c,), jnp.float32),
            var=jax.random.uniform(next(keys), (c,), jnp.float32, 0.5, 1.5))

    params = {}
    params["conv0"] = conv_w(7, 7, 3, INIT_FEATURES)
    params["norm0"] = bn_p(INIT_FEATURES)

    c = INIT_FEATURES
    blocks = []
    for bi, n_layers in enumerate(BLOCK_CONFIG):
        layers = []
        for _ in range(n_layers):
            lp = dict(
                norm1=bn_p(c),
                conv1=conv_w(1, 1, c, BN_SIZE * GROWTH),
                norm2=bn_p(BN_SIZE * GROWTH),
                conv2=conv_w(3, 3, BN_SIZE * GROWTH, GROWTH))
            layers.append(lp)
            c += GROWTH
        blocks.append(layers)
        if bi != len(BLOCK_CONFIG) - 1:
            params[f"trans{bi}_norm"] = bn_p(c)
            params[f"trans{bi}_conv"] = conv_w(1, 1, c, c // 2)
            c = c // 2
    params["blocks"] = blocks
    params["norm5"] = bn_p(c)
    params["out_channels"] = c
    return params


def dense_layer(x, lp):
    # norm1 -> relu -> conv1(1x1) -> norm2 -> relu -> conv2(3x3) -> concat
    s1, t1 = fold_bn(lp["norm1"])
    s2, t2 = fold_bn(lp["norm2"])
    y = conv2d(x, lp["conv1"], stride=1, padding=0,
               in_bn=(s1, t1, True), out_bn=(s2, t2, True))
    y = conv2d(y, lp["conv2"], stride=1, padding=1)
    # TODO(synk): DenseNet concat re-copies all previous channels every layer
    # (O(L^2) HBM traffic); a preallocated 128-lane-aligned channel buffer with
    # input_output_aliases would avoid it.
    return jnp.concatenate([x, y], axis=-1)


def feat_extractor(x, params):
    # DenseNet "features": conv0, norm0, relu0, pool0, blocks/transitions; the
    # trailing norm5 is fused into the head kernel.
    s0, t0 = fold_bn(params["norm0"])
    x = conv2d(x, params["conv0"], stride=2, padding=3, out_bn=(s0, t0, True))
    x = maxpool_3x3_s2_p1(x)
    for bi, layers in enumerate(params["blocks"]):
        for lp in layers:
            x = dense_layer(x, lp)
        if bi != len(params["blocks"]) - 1:
            st, tt = fold_bn(params[f"trans{bi}_norm"])
            x = conv2d(x, params[f"trans{bi}_conv"], stride=1, padding=0,
                       in_bn=(st, tt, True))
            x = avgpool_2x2_s2(x)
    return x


def feature_extractor_forward(x_nchw, params):
    """Mirrors FeatureExtractor.forward: features -> relu -> GAP(1,1) -> flatten."""
    x = jnp.transpose(x_nchw, (0, 2, 3, 1)).astype(jnp.bfloat16)  # NCHW -> NHWC bf16
    feats = feat_extractor(x, params)                             # (N, h, w, C) bf16
    s5, t5 = fold_bn(params["norm5"])
    return pallas_head(feats, s5, t5)                             # (N, C) f32


# ----------------------------------------------------------------------------
if __name__ == "__main__":
    key = jax.random.PRNGKey(0)
    k_param, k_input = jax.random.split(key)

    params = init_params(k_param)
    # Small NCHW input consistent with an image model: (batch=2, C=3, H=16, W=16)
    x = jax.random.normal(k_input, (2, 3, 16, 16), jnp.float32)

    fwd = jax.jit(lambda inp: feature_extractor_forward(inp, params))
    out = jax.block_until_ready(fwd(x))

    assert out.shape == (2, params["out_channels"]), out.shape
    assert bool(jnp.all(jnp.isfinite(out)))
    print("KERNEL_OK")
</pallas_src>

<mosaic_0001>
module attributes {stable_mosaic.version = 11 : i64} {
  func.func @_conv_mm_kernel(%arg0: i32, %arg1: i32, %arg2: i32, %arg3: memref<64x256xbf16, #tpu.memory_space<vmem>>, %arg4: memref<256x128xbf16, #tpu.memory_space<vmem>>, %arg5: memref<1x128xf32, #tpu.memory_space<vmem>>, %arg6: memref<1x128xf32, #tpu.memory_space<vmem>>, %arg7: memref<64x128xbf16, #tpu.memory_space<vmem>>, %arg8: memref<64x128xf32, #tpu.memory_space<vmem>>) attributes {dimension_semantics = [#tpu.dimension_semantics<parallel>, #tpu.dimension_semantics<parallel>, #tpu.dimension_semantics<arbitrary>], iteration_bounds = array<i64: 2, 1, 1>, scalar_prefetch = 0 : i64, scratch_operands = 1 : i64, tpu.core_type = #tpu.core_type<tc>, window_params = [{transform_indices = @transform_0, window_bounds = array<i64: 64, 256>}, {transform_indices = @transform_1, window_bounds = array<i64: 256, 128>}, {transform_indices = @transform_2, window_bounds = array<i64: 1, 128>}, {transform_indices = @transform_3, window_bounds = array<i64: 1, 128>}, {transform_indices = @transform_4, window_bounds = array<i64: 64, 128>}]} {
    %c0_i32 = arith.constant 0 : i32
    %0 = arith.cmpi eq, %arg2, %c0_i32 : i32
    %1 = arith.extui %0 : i1 to i32
    %c0_i32_0 = arith.constant 0 : i32
    %2 = arith.cmpi ne, %1, %c0_i32_0 : i32
    scf.if %2 {
      %cst_10 = arith.constant 0.000000e+00 : f32
      %12 = vector.broadcast %cst_10 : f32 to vector<64x128xf32>
      %c0_11 = arith.constant 0 : index
      %c0_12 = arith.constant 0 : index
      %13 = vector.load %arg8[%c0_11, %c0_12] : memref<64x128xf32, #tpu.memory_space<vmem>>, vector<64x128xf32>
      tpu.vector_store %arg8[%c0_11, %c0_12], %12 {strides = array<i32>} : memref<64x128xf32, #tpu.memory_space<vmem>>, vector<64x128xf32>,
    } else {
    }
    %c0 = arith.constant 0 : index
    %c0_1 = arith.constant 0 : index
    %3 = vector.load %arg3[%c0, %c0_1] : memref<64x256xbf16, #tpu.memory_space<vmem>>, vector<64x256xbf16>
    %c0_2 = arith.constant 0 : index
    %c0_3 = arith.constant 0 : index
    %4 = vector.load %arg8[%c0_2, %c0_3] : memref<64x128xf32, #tpu.memory_space<vmem>>, vector<64x128xf32>
    %c0_4 = arith.constant 0 : index
    %c0_5 = arith.constant 0 : index
    %5 = vector.load %arg4[%c0_4, %c0_5] : memref<256x128xbf16, #tpu.memory_space<vmem>>, vector<256x128xbf16>
    %cst = arith.constant dense<0.000000e+00> : vector<64x128xf32>
    %6 = tpu.matmul %3, %5, %cst {dimension_numbers = #tpu.dot_dimension_numbers<[1], [0], [0], [1], [0, 0, 1, 1], [], []>} : vector<64x256xbf16>, vector<256x128xbf16>, vector<64x128xf32> -> vector<64x128xf32>
    %7 = arith.addf %4, %6 : vector<64x128xf32>
    %c0_6 = arith.constant 0 : index
    %c0_7 = arith.constant 0 : index
    %8 = vector.load %arg8[%c0_6, %c0_7] : memref<64x128xf32, #tpu.memory_space<vmem>>, vector<64x128xf32>
    tpu.vector_store %arg8[%c0_6, %c0_7], %7 {strides = array<i32>} : memref<64x128xf32, #tpu.memory_space<vmem>>, vector<64x128xf32>,
    %c0_i32_8 = arith.constant 0 : i32
    %9 = arith.cmpi eq, %arg2, %c0_i32_8 : i32
    %10 = arith.extui %9 : i1 to i32
    %c0_i32_9 = arith.constant 0 : i32
    %11 = arith.cmpi ne, %10, %c0_i32_9 : i32
    scf.if %11 {
      %c0_10 = arith.constant 0 : index
      %c0_11 = arith.constant 0 : index
      %12 = vector.load %arg8[%c0_10, %c0_11] : memref<64x128xf32, #tpu.memory_space<vmem>>, vector<64x128xf32>
      %c0_12 = arith.constant 0 : index
      %c0_13 = arith.constant 0 : index
      %13 = vector.load %arg5[%c0_12, %c0_13] : memref<1x128xf32, #tpu.memory_space<vmem>>, vector<1x128xf32>
      %14 = vector.broadcast %13 : vector<1x128xf32> to vector<64x128xf32>
      %15 = arith.mulf %12, %14 : vector<64x128xf32>
      %c0_14 = arith.constant 0 : index
      %c0_15 = arith.constant 0 : index
      %16 = vector.load %arg6[%c0_14, %c0_15] : memref<1x128xf32, #tpu.memory_space<vmem>>, vector<1x128xf32>
      %17 = vector.broadcast %16 : vector<1x128xf32> to vector<64x128xf32>
      %18 = arith.addf %15, %17 : vector<64x128xf32>
      %cst_16 = arith.constant 0.000000e+00 : f32
      %19 = vector.broadcast %cst_16 : f32 to vector<64x128xf32>
      %20 = arith.maximumf %18, %19 : vector<64x128xf32>
      %21 = arith.truncf %20 : vector<64x128xf32> to vector<64x128xbf16>
      %c0_17 = arith.constant 0 : index
      %c0_18 = arith.constant 0 : index
      %22 = vector.load %arg7[%c0_17, %c0_18] : memref<64x128xbf16, #tpu.memory_space<vmem>>, vector<64x128xbf16>
      tpu.vector_store %arg7[%c0_17, %c0_18], %21 {strides = array<i32>} : memref<64x128xbf16, #tpu.memory_space<vmem>>, vector<64x128xbf16>,
    } else {
    }
    return
  }
  func.func @transform_0(%arg0: i32, %arg1: i32, %arg2: i32) -> (i32, i32) {
    %c0_i32 = arith.constant 0 : i32
    return %arg0, %arg2 : i32, i32
  }
  func.func @transform_1(%arg0: i32, %arg1: i32, %arg2: i32) -> (i32, i32) {
    %c0_i32 = arith.constant 0 : i32
    return %arg2, %arg1 : i32, i32
  }
  func.func @transform_2(%arg0: i32, %arg1: i32, %arg2: i32) -> (i32, i32) {
    %c0_i32 = arith.constant 0 : i32
    %c0_i32_0 = arith.constant 0 : i32
    return %c0_i32, %arg1 : i32, i32
  }
  func.func @transform_3(%arg0: i32, %arg1: i32, %arg2: i32) -> (i32, i32) {
    %c0_i32 = arith.constant 0 : i32
    %c0_i32_0 = arith.constant 0 : i32
    return %c0_i32, %arg1 : i32, i32
  }
  func.func @transform_4(%arg0: i32, %arg1: i32, %arg2: i32) -> (i32, i32) {
    %c0_i32 = arith.constant 0 : i32
    return %arg0, %arg1 : i32, i32
  }
}

module attributes {stable_mosaic.version = 11 : i64} {
  func.func @_conv_mm_kernel(%arg0: i32, %arg1: i32, %arg2: i32, %arg3: memref<16x128xbf16, #tpu.memory_space<vmem>>, %arg4: memref<128x128xbf16, #tpu.memory_space<vmem>>, %arg5: memref<1x128xbf16, #tpu.memory_space<vmem>>, %arg6: memref<1x128xbf16, #tpu.memory_space<vmem>>, %arg7: memref<1x128xf32, #tpu.memory_space<vmem>>, %arg8: memref<1x128xf32, #tpu.memory_space<vmem>>, %arg9: memref<16x128xbf16, #tpu.memory_space<vmem>>, %arg10: memref<16x128xf32, #tpu.memory_space<vmem>>) attributes {dimension_semantics = [#tpu.dimension_semantics<parallel>, #tpu.dimension_semantics<parallel>, #tpu.dimension_semantics<arbitrary>], iteration_bounds = array<i64: 2, 1, 1>, scalar_prefetch = 0 : i64, scratch_operands = 1 : i64, tpu.core_type = #tpu.core_type<tc>, window_params = [{transform_indices = @transform_0, window_bounds = array<i64: 16, 128>}, {transform_indices = @transform_1, window_bounds = array<i64: 128, 128>}, {transform_indices = @transform_2, window_bounds = array<i64: 1, 128>}, {transform_indices = @transform_3, window_bounds = array<i64: 1, 128>}, {transform_indices = @transform_4, window_bounds = array<i64: 1, 128>}, {transform_indices = @transform_5, window_bounds = array<i64: 1, 128>}, {transform_indices = @transform_6, window_bounds = array<i64: 16, 128>}]} {
    %c0_i32 = arith.constant 0 : i32
    %0 = arith.cmpi eq, %arg2, %c0_i32 : i32
    %1 = arith.extui %0 : i1 to i32
    %c0_i32_0 = arith.constant 0 : i32
    %2 = arith.cmpi ne, %1, %c0_i32_0 : i32
    scf.if %2 {
      %cst_15 = arith.constant 0.000000e+00 : f32
      %20 = vector.broadcast %cst_15 : f32 to vector<16x128xf32>
      %c0_16 = arith.constant 0 : index
      %c0_17 = arith.constant 0 : index
      %21 = vector.load %arg10[%c0_16, %c0_17] : memref<16x128xf32, #tpu.memory_space<vmem>>, vector<16x128xf32>
      tpu.vector_store %arg10[%c0_16, %c0_17], %20 {strides = array<i32>} : memref<16x128xf32, #tpu.memory_space<vmem>>, vector<16x128xf32>,
    } else {
    }
    %c0 = arith.constant 0 : index
    %c0_1 = arith.constant 0 : index
    %3 = vector.load %arg3[%c0, %c0_1] : memref<16x128xbf16, #tpu.memory_space<vmem>>, vector<16x128xbf16>
    %c0_2 = arith.constant 0 : index
    %c0_3 = arith.constant 0 : index
    %4 = vector.load %arg5[%c0_2, %c0_3] : memref<1x128xbf16, #tpu.memory_space<vmem>>, vector<1x128xbf16>
    %5 = vector.broadcast %4 : vector<1x128xbf16> to vector<16x128xbf16>
    %6 = arith.mulf %3, %5 : vector<16x128xbf16>
    %c0_4 = arith.constant 0 : index
    %c0_5 = arith.constant 0 : index
    %7 = vector.load %arg6[%c0_4, %c0_5] : memref<1x128xbf16, #tpu.memory_space<vmem>>, vector<1x128xbf16>
    %8 = vector.broadcast %7 : vector<1x128xbf16> to vector<16x128xbf16>
    %9 = arith.addf %6, %8 : vector<16x128xbf16>
    %cst = arith.constant 0.000000e+00 : bf16
    %10 = vector.broadcast %cst : bf16 to vector<16x128xbf16>
    %11 = arith.maximumf %9, %10 : vector<16x128xbf16>
    %c0_6 = arith.constant 0 : index
    %c0_7 = arith.constant 0 : index
    %12 = vector.load %arg10[%c0_6, %c0_7] : memref<16x128xf32, #tpu.memory_space<vmem>>, vector<16x128xf32>
    %c0_8 = arith.constant 0 : index
    %c0_9 = arith.constant 0 : index
    %13 = vector.load %arg4[%c0_8, %c0_9] : memref<128x128xbf16, #tpu.memory_space<vmem>>, vector<128x128xbf16>
    %cst_10 = arith.constant dense<0.000000e+00> : vector<16x128xf32>
    %14 = tpu.matmul %11, %13, %cst_10 {dimension_numbers = #tpu.dot_dimension_numbers<[1], [0], [0], [1], [0, 0, 1, 1], [], []>} : vector<16x128xbf16>, vector<128x128xbf16>, vector<16x128xf32> -> vector<16x128xf32>
    %15 = arith.addf %12, %14 : vector<16x128xf32>
    %c0_11 = arith.constant 0 : index
    %c0_12 = arith.constant 0 : index
    %16 = vector.load %arg10[%c0_11, %c0_12] : memref<16x128xf32, #tpu.memory_space<vmem>>, vector<16x128xf32>
    tpu.vector_store %arg10[%c0_11, %c0_12], %15 {strides = array<i32>} : memref<16x128xf32, #tpu.memory_space<vmem>>, vector<16x128xf32>,
    %c0_i32_13 = arith.constant 0 : i32
    %17 = arith.cmpi eq, %arg2, %c0_i32_13 : i32
    %18 = arith.extui %17 : i1 to i32
    %c0_i32_14 = arith.constant 0 : i32
    %19 = arith.cmpi ne, %18, %c0_i32_14 : i32
    scf.if %19 {
      %c0_15 = arith.constant 0 : index
      %c0_16 = arith.constant 0 : index
      %20 = vector.load %arg10[%c0_15, %c0_16] : memref<16x128xf32, #tpu.memory_space<vmem>>, vector<16x128xf32>
      %c0_17 = arith.constant 0 : index
      %c0_18 = arith.constant 0 : index
      %21 = vector.load %arg7[%c0_17, %c0_18] : memref<1x128xf32, #tpu.memory_space<vmem>>, vector<1x128xf32>
      %22 = vector.broadcast %21 : vector<1x128xf32> to vector<16x128xf32>
      %23 = arith.mulf %20, %22 : vector<16x128xf32>
      %c0_19 = arith.constant 0 : index
      %c0_20 = arith.constant 0 : index
      %24 = vector.load %arg8[%c0_19, %c0_20] : memref<1x128xf32, #tpu.memory_space<vmem>>, vector<1x128xf32>
      %25 = vector.broadcast %24 : vector<1x128xf32> to vector<16x128xf32>
      %26 = arith.addf %23, %25 : vector<16x128xf32>
      %cst_21 = arith.constant 0.000000e+00 : f32
      %27 = vector.broadcast %cst_21 : f32 to vector<16x128xf32>
      %28 = arith.maximumf %26, %27 : vector<16x128xf32>
      %29 = arith.truncf %28 : vector<16x128xf32> to vector<16x128xbf16>
      %c0_22 = arith.constant 0 : index
      %c0_23 = arith.constant 0 : index
      %30 = vector.load %arg9[%c0_22, %c0_23] : memref<16x128xbf16, #tpu.memory_space<vmem>>, vector<16x128xbf16>
      tpu.vector_store %arg9[%c0_22, %c0_23], %29 {strides = array<i32>} : memref<16x128xbf16, #tpu.memory_space<vmem>>, vector<16x128xbf16>,
    } else {
    }
    return
  }
  func.func @transform_0(%arg0: i32, %arg1: i32, %arg2: i32) -> (i32, i32) {
    %c0_i32 = arith.constant 0 : i32
    return %arg0, %arg2 : i32, i32
  }
  func.func @transform_1(%arg0: i32, %arg1: i32, %arg2: i32) -> (i32, i32) {
    %c0_i32 = arith.constant 0 : i32
    return %arg2, %arg1 : i32, i32
  }
  func.func @transform_2(%arg0: i32, %arg1: i32, %arg2: i32) -> (i32, i32) {
    %c0_i32 = arith.constant 0 : i32
    %c0_i32_0 = arith.constant 0 : i32
    return %c0_i32, %arg2 : i32, i32
  }
  func.func @transform_3(%arg0: i32, %arg1: i32, %arg2: i32) -> (i32, i32) {
    %c0_i32 = arith.constant 0 : i32
    %c0_i32_0 = arith.constant 0 : i32
    return %c0_i32, %arg2 : i32, i32
  }
  func.func @transform_4(%arg0: i32, %arg1: i32, %arg2: i32) -> (i32, i32) {
    %c0_i32 = arith.constant 0 : i32
    %c0_i32_0 = arith.constant 0 : i32
    return %c0_i32, %arg1 : i32, i32
  }
  func.func @transform_5(%arg0: i32, %arg1: i32, %arg2: i32) -> (i32, i32) {
    %c0_i32 = arith.constant 0 : i32
    %c0_i32_0 = arith.constant 0 : i32
    return %c0_i32, %arg1 : i32, i32
  }
  func.func @transform_6(%arg0: i32, %arg1: i32, %arg2: i32) -> (i32, i32) {
    %c0_i32 = arith.constant 0 : i32
    return %arg0, %arg1 : i32, i32
  }
}

module attributes {stable_mosaic.version = 11 : i64} {
  func.func @_conv_mm_kernel(%arg0: i32, %arg1: i32, %arg2: i32, %arg3: memref<16x128xbf16, #tpu.memory_space<vmem>>, %arg4: memref<128x128xbf16, #tpu.memory_space<vmem>>, %arg5: memref<1x128xbf16, #tpu.memory_space<vmem>>, %arg6: memref<1x128xbf16, #tpu.memory_space<vmem>>, %arg7: memref<16x128xbf16, #tpu.memory_space<vmem>>, %arg8: memref<16x128xf32, #tpu.memory_space<vmem>>) attributes {dimension_semantics = [#tpu.dimension_semantics<parallel>, #tpu.dimension_semantics<parallel>, #tpu.dimension_semantics<arbitrary>], iteration_bounds = array<i64: 2, 1, 1>, scalar_prefetch = 0 : i64, scratch_operands = 1 : i64, tpu.core_type = #tpu.core_type<tc>, window_params = [{transform_indices = @transform_0, window_bounds = array<i64: 16, 128>}, {transform_indices = @transform_1, window_bounds = array<i64: 128, 128>}, {transform_indices = @transform_2, window_bounds = array<i64: 1, 128>}, {transform_indices = @transform_3, window_bounds = array<i64: 1, 128>}, {transform_indices = @transform_4, window_bounds = array<i64: 16, 128>}]} {
    %c0_i32 = arith.constant 0 : i32
    %0 = arith.cmpi eq, %arg2, %c0_i32 : i32
    %1 = arith.extui %0 : i1 to i32
    %c0_i32_0 = arith.constant 0 : i32
    %2 = arith.cmpi ne, %1, %c0_i32_0 : i32
    scf.if %2 {
      %cst_15 = arith.constant 0.000000e+00 : f32
      %20 = vector.broadcast %cst_15 : f32 to vector<16x128xf32>
      %c0_16 = arith.constant 0 : index
      %c0_17 = arith.constant 0 : index
      %21 = vector.load %arg8[%c0_16, %c0_17] : memref<16x128xf32, #tpu.memory_space<vmem>>, vector<16x128xf32>
      tpu.vector_store %arg8[%c0_16, %c0_17], %20 {strides = array<i32>} : memref<16x128xf32, #tpu.memory_space<vmem>>, vector<16x128xf32>,
    } else {
    }
    %c0 = arith.constant 0 : index
    %c0_1 = arith.constant 0 : index
    %3 = vector.load %arg3[%c0, %c0_1] : memref<16x128xbf16, #tpu.memory_space<vmem>>, vector<16x128xbf16>
    %c0_2 = arith.constant 0 : index
    %c0_3 = arith.constant 0 : index
    %4 = vector.load %arg5[%c0_2, %c0_3] : memref<1x128xbf16, #tpu.memory_space<vmem>>, vector<1x128xbf16>
    %5 = vector.broadcast %4 : vector<1x128xbf16> to vector<16x128xbf16>
    %6 = arith.mulf %3, %5 : vector<16x128xbf16>
    %c0_4 = arith.constant 0 : index
    %c0_5 = arith.constant 0 : index
    %7 = vector.load %arg6[%c0_4, %c0_5] : memref<1x128xbf16, #tpu.memory_space<vmem>>, vector<1x128xbf16>
    %8 = vector.broadcast %7 : vector<1x128xbf16> to vector<16x128xbf16>
    %9 = arith.addf %6, %8 : vector<16x128xbf16>
    %cst = arith.constant 0.000000e+00 : bf16
    %10 = vector.broadcast %cst : bf16 to vector<16x128xbf16>
    %11 = arith.maximumf %9, %10 : vector<16x128xbf16>
    %c0_6 = arith.constant 0 : index
    %c0_7 = arith.constant 0 : index
    %12 = vector.load %arg8[%c0_6, %c0_7] : memref<16x128xf32, #tpu.memory_space<vmem>>, vector<16x128xf32>
    %c0_8 = arith.constant 0 : index
    %c0_9 = arith.constant 0 : index
    %13 = vector.load %arg4[%c0_8, %c0_9] : memref<128x128xbf16, #tpu.memory_space<vmem>>, vector<128x128xbf16>
    %cst_10 = arith.constant dense<0.000000e+00> : vector<16x128xf32>
    %14 = tpu.matmul %11, %13, %cst_10 {dimension_numbers = #tpu.dot_dimension_numbers<[1], [0], [0], [1], [0, 0, 1, 1], [], []>} : vector<16x128xbf16>, vector<128x128xbf16>, vector<16x128xf32> -> vector<16x128xf32>
    %15 = arith.addf %12, %14 : vector<16x128xf32>
    %c0_11 = arith.constant 0 : index
    %c0_12 = arith.constant 0 : index
    %16 = vector.load %arg8[%c0_11, %c0_12] : memref<16x128xf32, #tpu.memory_space<vmem>>, vector<16x128xf32>
    tpu.vector_store %arg8[%c0_11, %c0_12], %15 {strides = array<i32>} : memref<16x128xf32, #tpu.memory_space<vmem>>, vector<16x128xf32>,
    %c0_i32_13 = arith.constant 0 : i32
    %17 = arith.cmpi eq, %arg2, %c0_i32_13 : i32
    %18 = arith.extui %17 : i1 to i32
    %c0_i32_14 = arith.constant 0 : i32
    %19 = arith.cmpi ne, %18, %c0_i32_14 : i32
    scf.if %19 {
      %c0_15 = arith.constant 0 : index
      %c0_16 = arith.constant 0 : index
      %20 = vector.load %arg8[%c0_15, %c0_16] : memref<16x128xf32, #tpu.memory_space<vmem>>, vector<16x128xf32>
      %21 = arith.truncf %20 : vector<16x128xf32> to vector<16x128xbf16>
      %c0_17 = arith.constant 0 : index
      %c0_18 = arith.constant 0 : index
      %22 = vector.load %arg7[%c0_17, %c0_18] : memref<16x128xbf16, #tpu.memory_space<vmem>>, vector<16x128xbf16>
      tpu.vector_store %arg7[%c0_17, %c0_18], %21 {strides = array<i32>} : memref<16x128xbf16, #tpu.memory_space<vmem>>, vector<16x128xbf16>,
    } else {
    }
    return
  }
  func.func @transform_0(%arg0: i32, %arg1: i32, %arg2: i32) -> (i32, i32) {
    %c0_i32 = arith.constant 0 : i32
    return %arg0, %arg2 : i32, i32
  }
  func.func @transform_1(%arg0: i32, %arg1: i32, %arg2: i32) -> (i32, i32) {
    %c0_i32 = arith.constant 0 : i32
    return %arg2, %arg1 : i32, i32
  }
  func.func @transform_2(%arg0: i32, %arg1: i32, %arg2: i32) -> (i32, i32) {
    %c0_i32 = arith.constant 0 : i32
    %c0_i32_0 = arith.constant 0 : i32
    return %c0_i32, %arg2 : i32, i32
  }
  func.func @transform_3(%arg0: i32, %arg1: i32, %arg2: i32) -> (i32, i32) {
    %c0_i32 = arith.constant 0 : i32
    %c0_i32_0 = arith.constant 0 : i32
    return %c0_i32, %arg2 : i32, i32
  }
  func.func @transform_4(%arg0: i32, %arg1: i32, %arg2: i32) -> (i32, i32) {
    %c0_i32 = arith.constant 0 : i32
    return %arg0, %arg1 : i32, i32
  }
}

module attributes {stable_mosaic.version = 11 : i64} {
  func.func @_conv_mm_kernel(%arg0: i32, %arg1: i32, %arg2: i32, %arg3: memref<16x256xbf16, #tpu.memory_space<vmem>>, %arg4: memref<256x128xbf16, #tpu.memory_space<vmem>>, %arg5: memref<16x128xbf16, #tpu.memory_space<vmem>>, %arg6: memref<16x128xf32, #tpu.memory_space<vmem>>) attributes {dimension_semantics = [#tpu.dimension_semantics<parallel>, #tpu.dimension_semantics<parallel>, #tpu.dimension_semantics<arbitrary>], iteration_bounds = array<i64: 2, 1, 2>, scalar_prefetch = 0 : i64, scratch_operands = 1 : i64, tpu.core_type = #tpu.core_type<tc>, window_params = [{transform_indices = @transform_0, window_bounds = array<i64: 16, 256>}, {transform_indices = @transform_1, window_bounds = array<i64: 256, 128>}, {transform_indices = @transform_2, window_bounds = array<i64: 16, 128>}]} {
    %c0_i32 = arith.constant 0 : i32
    %0 = arith.cmpi eq, %arg2, %c0_i32 : i32
    %1 = arith.extui %0 : i1 to i32
    %c0_i32_0 = arith.constant 0 : i32
    %2 = arith.cmpi ne, %1, %c0_i32_0 : i32
    scf.if %2 {
      %cst_9 = arith.constant 0.000000e+00 : f32
      %12 = vector.broadcast %cst_9 : f32 to vector<16x128xf32>
      %c0_10 = arith.constant 0 : index
      %c0_11 = arith.constant 0 : index
      %13 = vector.load %arg6[%c0_10, %c0_11] : memref<16x128xf32, #tpu.memory_space<vmem>>, vector<16x128xf32>
      tpu.vector_store %arg6[%c0_10, %c0_11], %12 {strides = array<i32>} : memref<16x128xf32, #tpu.memory_space<vmem>>, vector<16x128xf32>,
    } else {
    }
    %c0 = arith.constant 0 : index
    %c0_1 = arith.constant 0 : index
    %3 = vector.load %arg3[%c0, %c0_1] : memref<16x256xbf16, #tpu.memory_space<vmem>>, vector<16x256xbf16>
    %c0_2 = arith.constant 0 : index
    %c0_3 = arith.constant 0 : index
    %4 = vector.load %arg6[%c0_2, %c0_3] : memref<16x128xf32, #tpu.memory_space<vmem>>, vector<16x128xf32>
    %c0_4 = arith.constant 0 : index
    %c0_5 = arith.constant 0 : index
    %5 = vector.load %arg4[%c0_4, %c0_5] : memref<256x128xbf16, #tpu.memory_space<vmem>>, vector<256x128xbf16>
    %cst = arith.constant dense<0.000000e+00> : vector<16x128xf32>
    %6 = tpu.matmul %3, %5, %cst {dimension_numbers = #tpu.dot_dimension_numbers<[1], [0], [0], [1], [0, 0, 1, 1], [], []>} : vector<16x256xbf16>, vector<256x128xbf16>, vector<16x128xf32> -> vector<16x128xf32>
    %7 = arith.addf %4, %6 : vector<16x128xf32>
    %c0_6 = arith.constant 0 : index
    %c0_7 = arith.constant 0 : index
    %8 = vector.load %arg6[%c0_6, %c0_7] : memref<16x128xf32, #tpu.memory_space<vmem>>, vector<16x128xf32>
    tpu.vector_store %arg6[%c0_6, %c0_7], %7 {strides = array<i32>} : memref<16x128xf32, #tpu.memory_space<vmem>>, vector<16x128xf32>,
    %c1_i32 = arith.constant 1 : i32
    %9 = arith.cmpi eq, %arg2, %c1_i32 : i32
    %10 = arith.extui %9 : i1 to i32
    %c0_i32_8 = arith.constant 0 : i32
    %11 = arith.cmpi ne, %10, %c0_i32_8 : i32
    scf.if %11 {
      %c0_9 = arith.constant 0 : index
      %c0_10 = arith.constant 0 : index
      %12 = vector.load %arg6[%c0_9, %c0_10] : memref<16x128xf32, #tpu.memory_space<vmem>>, vector<16x128xf32>
      %13 = arith.truncf %12 : vector<16x128xf32> to vector<16x128xbf16>
      %c0_11 = arith.constant 0 : index
      %c0_12 = arith.constant 0 : index
      %14 = vector.load %arg5[%c0_11, %c0_12] : memref<16x128xbf16, #tpu.memory_space<vmem>>, vector<16x128xbf16>
      tpu.vector_store %arg5[%c0_11, %c0_12], %13 {strides = array<i32>} : memref<16x128xbf16, #tpu.memory_space<vmem>>, vector<16x128xbf16>,
    } else {
    }
    return
  }
  func.func @transform_0(%arg0: i32, %arg1: i32, %arg2: i32) -> (i32, i32) {
    %c0_i32 = arith.constant 0 : i32
    return %arg0, %arg2 : i32, i32
  }
  func.func @transform_1(%arg0: i32, %arg1: i32, %arg2: i32) -> (i32, i32) {
    %c0_i32 = arith.constant 0 : i32
    return %arg2, %arg1 : i32, i32
  }
  func.func @transform_2(%arg0: i32, %arg1: i32, %arg2: i32) -> (i32, i32) {
    %c0_i32 = arith.constant 0 : i32
    return %arg0, %arg1 : i32, i32
  }
}

module attributes {stable_mosaic.version = 11 : i64} {
  func.func @_conv_mm_kernel(%arg0: i32, %arg1: i32, %arg2: i32, %arg3: memref<16x128xbf16, #tpu.memory_space<vmem>>, %arg4: memref<128x128xbf16, #tpu.memory_space<vmem>>, %arg5: memref<1x128xbf16, #tpu.memory_space<vmem>>, %arg6: memref<1x128xbf16, #tpu.memory_space<vmem>>, %arg7: memref<1x128xf32, #tpu.memory_space<vmem>>, %arg8: memref<1x128xf32, #tpu.memory_space<vmem>>, %arg9: memref<16x128xbf16, #tpu.memory_space<vmem>>, %arg10: memref<16x128xf32, #tpu.memory_space<vmem>>) attributes {dimension_semantics = [#tpu.dimension_semantics<parallel>, #tpu.dimension_semantics<parallel>, #tpu.dimension_semantics<arbitrary>], iteration_bounds = array<i64: 1, 1, 1>, scalar_prefetch = 0 : i64, scratch_operands = 1 : i64, tpu.core_type = #tpu.core_type<tc>, window_params = [{transform_indices = @transform_0, window_bounds = array<i64: 16, 128>}, {transform_indices = @transform_1, window_bounds = array<i64: 128, 128>}, {transform_indices = @transform_2, window_bounds = array<i64: 1, 128>}, {transform_indices = @transform_3, window_bounds = array<i64: 1, 128>}, {transform_indices = @transform_4, window_bounds = array<i64: 1, 128>}, {transform_indices = @transform_5, window_bounds = array<i64: 1, 128>}, {transform_indices = @transform_6, window_bounds = array<i64: 16, 128>}]} {
    %c0_i32 = arith.constant 0 : i32
    %0 = arith.cmpi eq, %arg2, %c0_i32 : i32
    %1 = arith.extui %0 : i1 to i32
    %c0_i32_0 = arith.constant 0 : i32
    %2 = arith.cmpi ne, %1, %c0_i32_0 : i32
    scf.if %2 {
      %cst_15 = arith.constant 0.000000e+00 : f32
      %20 = vector.broadcast %cst_15 : f32 to vector<16x128xf32>
      %c0_16 = arith.constant 0 : index
      %c0_17 = arith.constant 0 : index
      %21 = vector.load %arg10[%c0_16, %c0_17] : memref<16x128xf32, #tpu.memory_space<vmem>>, vector<16x128xf32>
      tpu.vector_store %arg10[%c0_16, %c0_17], %20 {strides = array<i32>} : memref<16x128xf32, #tpu.memory_space<vmem>>, vector<16x128xf32>,
    } else {
    }
    %c0 = arith.constant 0 : index
    %c0_1 = arith.constant 0 : index
    %3 = vector.load %arg3[%c0, %c0_1] : memref<16x128xbf16, #tpu.memory_space<vmem>>, vector<16x128xbf16>
    %c0_2 = arith.constant 0 : index
    %c0_3 = arith.constant 0 : index
    %4 = vector.load %arg5[%c0_2, %c0_3] : memref<1x128xbf16, #tpu.memory_space<vmem>>, vector<1x128xbf16>
    %5 = vector.broadcast %4 : vector<1x128xbf16> to vector<16x128xbf16>
    %6 = arith.mulf %3, %5 : vector<16x128xbf16>
    %c0_4 = arith.constant 0 : index
    %c0_5 = arith.constant 0 : index
    %7 = vector.load %arg6[%c0_4, %c0_5] : memref<1x128xbf16, #tpu.memory_space<vmem>>, vector<1x128xbf16>
    %8 = vector.broadcast %7 : vector<1x128xbf16> to vector<16x128xbf16>
    %9 = arith.addf %6, %8 : vector<16x128xbf16>
    %cst = arith.constant 0.000000e+00 : bf16
    %10 = vector.broadcast %cst : bf16 to vector<16x128xbf16>
    %11 = arith.maximumf %9, %10 : vector<16x128xbf16>
    %c0_6 = arith.constant 0 : index
    %c0_7 = arith.constant 0 : index
    %12 = vector.load %arg10[%c0_6, %c0_7] : memref<16x128xf32, #tpu.memory_space<vmem>>, vector<16x128xf32>
    %c0_8 = arith.constant 0 : index
    %c0_9 = arith.constant 0 : index
    %13 = vector.load %arg4[%c0_8, %c0_9] : memref<128x128xbf16, #tpu.memory_space<vmem>>, vector<128x128xbf16>
    %cst_10 = arith.constant dense<0.000000e+00> : vector<16x128xf32>
    %14 = tpu.matmul %11, %13, %cst_10 {dimension_numbers = #tpu.dot_dimension_numbers<[1], [0], [0], [1], [0, 0, 1, 1], [], []>} : vector<16x128xbf16>, vector<128x128xbf16>, vector<16x128xf32> -> vector<16x128xf32>
    %15 = arith.addf %12, %14 : vector<16x128xf32>
    %c0_11 = arith.constant 0 : index
    %c0_12 = arith.constant 0 : index
    %16 = vector.load %arg10[%c0_11, %c0_12] : memref<16x128xf32, #tpu.memory_space<vmem>>, vector<16x128xf32>
    tpu.vector_store %arg10[%c0_11, %c0_12], %15 {strides = array<i32>} : memref<16x128xf32, #tpu.memory_space<vmem>>, vector<16x128xf32>,
    %c0_i32_13 = arith.constant 0 : i32
    %17 = arith.cmpi eq, %arg2, %c0_i32_13 : i32
    %18 = arith.extui %17 : i1 to i32
    %c0_i32_14 = arith.constant 0 : i32
    %19 = arith.cmpi ne, %18, %c0_i32_14 : i32
    scf.if %19 {
      %c0_15 = arith.constant 0 : index
      %c0_16 = arith.constant 0 : index
      %20 = vector.load %arg10[%c0_15, %c0_16] : memref<16x128xf32, #tpu.memory_space<vmem>>, vector<16x128xf32>
      %c0_17 = arith.constant 0 : index
      %c0_18 = arith.constant 0 : index
      %21 = vector.load %arg7[%c0_17, %c0_18] : memref<1x128xf32, #tpu.memory_space<vmem>>, vector<1x128xf32>
      %22 = vector.broadcast %21 : vector<1x128xf32> to vector<16x128xf32>
      %23 = arith.mulf %20, %22 : vector<16x128xf32>
      %c0_19 = arith.constant 0 : index
      %c0_20 = arith.constant 0 : index
      %24 = vector.load %arg8[%c0_19, %c0_20] : memref<1x128xf32, #tpu.memory_space<vmem>>, vector<1x128xf32>
      %25 = vector.broadcast %24 : vector<1x128xf32> to vector<16x128xf32>
      %26 = arith.addf %23, %25 : vector<16x128xf32>
      %cst_21 = arith.constant 0.000000e+00 : f32
      %27 = vector.broadcast %cst_21 : f32 to vector<16x128xf32>
      %28 = arith.maximumf %26, %27 : vector<16x128xf32>
      %29 = arith.truncf %28 : vector<16x128xf32> to vector<16x128xbf16>
      %c0_22 = arith.constant 0 : index
      %c0_23 = arith.constant 0 : index
      %30 = vector.load %arg9[%c0_22, %c0_23] : memref<16x128xbf16, #tpu.memory_space<vmem>>, vector<16x128xbf16>
      tpu.vector_store %arg9[%c0_22, %c0_23], %29 {strides = array<i32>} : memref<16x128xbf16, #tpu.memory_space<vmem>>, vector<16x128xbf16>,
    } else {
    }
    return
  }
  func.func @transform_0(%arg0: i32, %arg1: i32, %arg2: i32) -> (i32, i32) {
    %c0_i32 = arith.constant 0 : i32
    return %arg0, %arg2 : i32, i32
  }
  func.func @transform_1(%arg0: i32, %arg1: i32, %arg2: i32) -> (i32, i32) {
    %c0_i32 = arith.constant 0 : i32
    return %arg2, %arg1 : i32, i32
  }
  func.func @transform_2(%arg0: i32, %arg1: i32, %arg2: i32) -> (i32, i32) {
    %c0_i32 = arith.constant 0 : i32
    %c0_i32_0 = arith.constant 0 : i32
    return %c0_i32, %arg2 : i32, i32
  }
  func.func @transform_3(%arg0: i32, %arg1: i32, %arg2: i32) -> (i32, i32) {
    %c0_i32 = arith.constant 0 : i32
    %c0_i32_0 = arith.constant 0 : i32
    return %c0_i32, %arg2 : i32, i32
  }
  func.func @transform_4(%arg0: i32, %arg1: i32, %arg2: i32) -> (i32, i32) {
    %c0_i32 = arith.constant 0 : i32
    %c0_i32_0 = arith.constant 0 : i32
    return %c0_i32, %arg1 : i32, i32
  }
  func.func @transform_5(%arg0: i32, %arg1: i32, %arg2: i32) -> (i32, i32) {
    %c0_i32 = arith.constant 0 : i32
    %c0_i32_0 = arith.constant 0 : i32
    return %c0_i32, %arg1 : i32, i32
  }
  func.func @transform_6(%arg0: i32, %arg1: i32, %arg2: i32) -> (i32, i32) {
    %c0_i32 = arith.constant 0 : i32
    return %arg0, %arg1 : i32, i32
  }
}

module attributes {stable_mosaic.version = 11 : i64} {
  func.func @_conv_mm_kernel(%arg0: i32, %arg1: i32, %arg2: i32, %arg3: memref<16x256xbf16, #tpu.memory_space<vmem>>, %arg4: memref<256x128xbf16, #tpu.memory_space<vmem>>, %arg5: memref<16x128xbf16, #tpu.memory_space<vmem>>, %arg6: memref<16x128xf32, #tpu.memory_space<vmem>>) attributes {dimension_semantics = [#tpu.dimension_semantics<parallel>, #tpu.dimension_semantics<parallel>, #tpu.dimension_semantics<arbitrary>], iteration_bounds = array<i64: 1, 1, 2>, scalar_prefetch = 0 : i64, scratch_operands = 1 : i64, tpu.core_type = #tpu.core_type<tc>, window_params = [{transform_indices = @transform_0, window_bounds = array<i64: 16, 256>}, {transform_indices = @transform_1, window_bounds = array<i64: 256, 128>}, {transform_indices = @transform_2, window_bounds = array<i64: 16, 128>}]} {
    %c0_i32 = arith.constant 0 : i32
    %0 = arith.cmpi eq, %arg2, %c0_i32 : i32
    %1 = arith.extui %0 : i1 to i32
    %c0_i32_0 = arith.constant 0 : i32
    %2 = arith.cmpi ne, %1, %c0_i32_0 : i32
    scf.if %2 {
      %cst_9 = arith.constant 0.000000e+00 : f32
      %12 = vector.broadcast %cst_9 : f32 to vector<16x128xf32>
      %c0_10 = arith.constant 0 : index
      %c0_11 = arith.constant 0 : index
      %13 = vector.load %arg6[%c0_10, %c0_11] : memref<16x128xf32, #tpu.memory_space<vmem>>, vector<16x128xf32>
      tpu.vector_store %arg6[%c0_10, %c0_11], %12 {strides = array<i32>} : memref<16x128xf32, #tpu.memory_space<vmem>>, vector<16x128xf32>,
    } else {
    }
    %c0 = arith.constant 0 : index
    %c0_1 = arith.constant 0 : index
    %3 = vector.load %arg3[%c0, %c0_1] : memref<16x256xbf16, #tpu.memory_space<vmem>>, vector<16x256xbf16>
    %c0_2 = arith.constant 0 : index
    %c0_3 = arith.constant 0 : index
    %4 = vector.load %arg6[%c0_2, %c0_3] : memref<16x128xf32, #tpu.memory_space<vmem>>, vector<16x128xf32>
    %c0_4 = arith.constant 0 : index
    %c0_5 = arith.constant 0 : index
    %5 = vector.load %arg4[%c0_4, %c0_5] : memref<256x128xbf16, #tpu.memory_space<vmem>>, vector<256x128xbf16>
    %cst = arith.constant dense<0.000000e+00> : vector<16x128xf32>
    %6 = tpu.matmul %3, %5, %cst {dimension_numbers = #tpu.dot_dimension_numbers<[1], [0], [0], [1], [0, 0, 1, 1], [], []>} : vector<16x256xbf16>, vector<256x128xbf16>, vector<16x128xf32> -> vector<16x128xf32>
    %7 = arith.addf %4, %6 : vector<16x128xf32>
    %c0_6 = arith.constant 0 : index
    %c0_7 = arith.constant 0 : index
    %8 = vector.load %arg6[%c0_6, %c0_7] : memref<16x128xf32, #tpu.memory_space<vmem>>, vector<16x128xf32>
    tpu.vector_store %arg6[%c0_6, %c0_7], %7 {strides = array<i32>} : memref<16x128xf32, #tpu.memory_space<vmem>>, vector<16x128xf32>,
    %c1_i32 = arith.constant 1 : i32
    %9 = arith.cmpi eq, %arg2, %c1_i32 : i32
    %10 = arith.extui %9 : i1 to i32
    %c0_i32_8 = arith.constant 0 : i32
    %11 = arith.cmpi ne, %10, %c0_i32_8 : i32
    scf.if %11 {
      %c0_9 = arith.constant 0 : index
      %c0_10 = arith.constant 0 : index
      %12 = vector.load %arg6[%c0_9, %c0_10] : memref<16x128xf32, #tpu.memory_space<vmem>>, vector<16x128xf32>
      %13 = arith.truncf %12 : vector<16x128xf32> to vector<16x128xbf16>
      %c0_11 = arith.constant 0 : index
      %c0_12 = arith.constant 0 : index
      %14 = vector.load %arg5[%c0_11, %c0_12] : memref<16x128xbf16, #tpu.memory_space<vmem>>, vector<16x128xbf16>
      tpu.vector_store %arg5[%c0_11, %c0_12], %13 {strides = array<i32>} : memref<16x128xbf16, #tpu.memory_space<vmem>>, vector<16x128xbf16>,
    } else {
    }
    return
  }
  func.func @transform_0(%arg0: i32, %arg1: i32, %arg2: i32) -> (i32, i32) {
    %c0_i32 = arith.constant 0 : i32
    return %arg0, %arg2 : i32, i32
  }
  func.func @transform_1(%arg0: i32, %arg1: i32, %arg2: i32) -> (i32, i32) {
    %c0_i32 = arith.constant 0 : i32
    return %arg2, %arg1 : i32, i32
  }
  func.func @transform_2(%arg0: i32, %arg1: i32, %arg2: i32) -> (i32, i32) {
    %c0_i32 = arith.constant 0 : i32
    return %arg0, %arg1 : i32, i32
  }
}

module attributes {stable_mosaic.version = 11 : i64} {
  func.func @_head_kernel(%arg0: i32, %arg1: memref<1x4x128xbf16, #tpu.memory_space<vmem>>, %arg2: memref<1x1x128xf32, #tpu.memory_space<vmem>>, %arg3: memref<1x1x128xf32, #tpu.memory_space<vmem>>, %arg4: memref<1x1x128xf32, #tpu.memory_space<vmem>>) attributes {dimension_semantics = [#tpu.dimension_semantics<parallel>], iteration_bounds = array<i64: 2>, scalar_prefetch = 0 : i64, scratch_operands = 0 : i64, tpu.core_type = #tpu.core_type<tc>, window_params = [{transform_indices = @transform_0, window_bounds = array<i64: 1, 4, 128>}, {pipeline_mode = #tpu.pipeline_mode<synchronous>, transform_indices = @transform_1, window_bounds = array<i64: 1, 1, 128>}, {pipeline_mode = #tpu.pipeline_mode<synchronous>, transform_indices = @transform_2, window_bounds = array<i64: 1, 1, 128>}, {transform_indices = @transform_3, window_bounds = array<i64: 1, 1, 128>}]} {
    %c0 = arith.constant 0 : index
    %c0_0 = arith.constant 0 : index
    %c0_1 = arith.constant 0 : index
    %0 = vector.load %arg1[%c0, %c0_0, %c0_1] : memref<1x4x128xbf16, #tpu.memory_space<vmem>>, vector<1x4x128xbf16>
    %1 = arith.extf %0 : vector<1x4x128xbf16> to vector<1x4x128xf32>
    %c0_2 = arith.constant 0 : index
    %c0_3 = arith.constant 0 : index
    %c0_4 = arith.constant 0 : index
    %2 = vector.load %arg2[%c0_2, %c0_3, %c0_4] : memref<1x1x128xf32, #tpu.memory_space<vmem>>, vector<1x1x128xf32>
    %3 = vector.broadcast %2 : vector<1x1x128xf32> to vector<1x4x128xf32>
    %4 = arith.mulf %1, %3 : vector<1x4x128xf32>
    %c0_5 = arith.constant 0 : index
    %c0_6 = arith.constant 0 : index
    %c0_7 = arith.constant 0 : index
    %5 = vector.load %arg3[%c0_5, %c0_6, %c0_7] : memref<1x1x128xf32, #tpu.memory_space<vmem>>, vector<1x1x128xf32>
    %6 = vector.broadcast %5 : vector<1x1x128xf32> to vector<1x4x128xf32>
    %7 = arith.addf %4, %6 : vector<1x4x128xf32>
    %cst = arith.constant 0.000000e+00 : f32
    %8 = vector.broadcast %cst : f32 to vector<1x4x128xf32>
    %9 = arith.maximumf %7, %8 : vector<1x4x128xf32>
    %cst_8 = arith.constant dense<0.000000e+00> : vector<1x128xf32>
    %10 = vector.multi_reduction <add>, %9, %cst_8 [1] : vector<1x4x128xf32> to vector<1x128xf32>
    %11 = vector.shape_cast %10 : vector<1x128xf32> to vector<1x1x128xf32>
    %cst_9 = arith.constant 2.500000e-01 : f32
    %12 = vector.broadcast %cst_9 : f32 to vector<1x1x128xf32>
    %13 = arith.mulf %11, %12 : vector<1x1x128xf32>
    %c0_10 = arith.constant 0 : index
    %c0_11 = arith.constant 0 : index
    %c0_12 = arith.constant 0 : index
    %14 = vector.load %arg4[%c0_10, %c0_11, %c0_12] : memref<1x1x128xf32, #tpu.memory_space<vmem>>, vector<1x1x128xf32>
    tpu.vector_store %arg4[%c0_10, %c0_11, %c0_12], %13 {strides = array<i32>} : memref<1x1x128xf32, #tpu.memory_space<vmem>>, vector<1x1x128xf32>,
    return
  }
  func.func @transform_0(%arg0: i32) -> (i32, i32, i32) {
    %c0_i32 = arith.constant 0 : i32
    %c0_i32_0 = arith.constant 0 : i32
    %c0_i32_1 = arith.constant 0 : i32
    return %arg0, %c0_i32, %c0_i32_0 : i32, i32, i32
  }
  func.func @transform_1(%arg0: i32) -> (i32, i32, i32) {
    %c0_i32 = arith.constant 0 : i32
    %c0_i32_0 = arith.constant 0 : i32
    %c0_i32_1 = arith.constant 0 : i32
    %c0_i32_2 = arith.constant 0 : i32
    return %c0_i32, %c0_i32_0, %c0_i32_1 : i32, i32, i32
  }
  func.func @transform_2(%arg0: i32) -> (i32, i32, i32) {
    %c0_i32 = arith.constant 0 : i32
    %c0_i32_0 = arith.constant 0 : i32
    %c0_i32_1 = arith.constant 0 : i32
    %c0_i32_2 = arith.constant 0 : i32
    return %c0_i32, %c0_i32_0, %c0_i32_1 : i32, i32, i32
  }
  func.func @transform_3(%arg0: i32) -> (i32, i32, i32) {
    %c0_i32 = arith.constant 0 : i32
    %c0_i32_0 = arith.constant 0 : i32
    %c0_i32_1 = arith.constant 0 : i32
    return %arg0, %c0_i32, %c0_i32_0 : i32, i32, i32
  }
}

</mosaic_0001>

<bundles_post_ra>
// kernel: _lambda_.16
= control target key start
LH: loop header
LB: loop body
LE: loop exit
PB: predicated region body
PF: predicated region fallthrough
CT: control target
= control target key end

     0   :  { %s744_s15 = smov 0   ;;  %s746_s16 = smov 0   ;;  %s814_s0 = inlined_call_operand.vmem [shape: bf16[32,128], index: 0, kind: input, shape index: {}]   ;;  %s815_s1 = inlined_call_operand.vmem [shape: bf16[128,128], index: 1, kind: input, shape index: {}]   ;;  %s816_s2 = inlined_call_operand.vmem [shape: bf16[1,128], index: 2, kind: input, shape index: {}]   ;;  %s817_s3 = inlined_call_operand.vmem [shape: bf16[1,128], index: 3, kind: input, shape index: {}]   ;;  %s818_s4 = inlined_call_operand.vmem [shape: bf16[32,128], index: 4, kind: output, shape index: {}]  }
   0x1   :  { %s748_s17 = smov 0  }
   0x2 LB: > { %s33_s18 = sadd.s32 1, %s710_s16  ;;  %p601_p0 = scmp.ge.s32.totalorder %s714_s17, 1  ;;  %s714_s17 = sphi %s748_s17, %s14_s17   ;;  %s710_s16 = sphi %s746_s16, %s820_s16   ;;  %s706_s15 = sphi %s744_s15, %s819_s15  }
   0x3   : > { %p35_p1 = scmp.ge.s32.totalorder %s33_s18, 2  ;;  %p221_p2 = scmp.lt.s32.totalorder %s714_s17, 3 }
   0x5   : > { %s822_s18 = smov (%p35_p1, %s33_s18), 0  ;;  %p222_p3 = pnand %p601_p0, %p221_p2 }
   0x6   : > { %v684_v0 = vld [vmem:[%s815_s1] sm:$0xff] (!%p222_p3)   ;;  %v313_v1 = vlaneseq (!%p222_p3)  ;;  %v716_v2 = vmov (!%p222_p3), 0.0   ;;  %v685_v3 = vld [vmem:[%s815_s1 + $0x8] sm:$0xff] (!%p222_p3)   ;;  %vm717_vm0 = vmmov (!%p222_p3), 0   ;;  %s602_s23 = sshll.u32 (!%p222_p3), %s706_s15, 1  ;;  %v686_v5 = vld [vmem:[%s815_s1 + $0x10] sm:$0xff] (!%p222_p3)  }
   0x7   : > { %225 = sbr.rel (%p222_p3) target bundleno = 256 (0x100), region = 36  ;;  %637 = vmatprep.subr.bf16.mxu0 (!%p222_p3), %v716_v2  ;;  %653 = vmatprep.mubr.msk.bf16.mxu0 (!%p222_p3), %vm717_vm0, %v716_v2  ;;  %p268_p4 = scmp.lt.s32.totalorder (!%p222_p3), %s602_s23, 3  ;;  %v309_v7 = vld [vmem:[%s816_s2] sm:$0x1] (!%p222_p3)  ;;  %v687_v11 = vld [vmem:[%s815_s1 + $0x18] sm:$0xff] (!%p222_p3)   ;;  %v689_v21 = vld [vmem:[%s815_s1 + $0x28] sm:$0xff] (!%p222_p3)  }
   0x8   : > { %638 = vmatpush3.bf16.msra.mxu0 (!%p222_p3), %v684_v0  ;;  %v314_v4 = vshrl.u32 (!%p222_p3), %v313_v1, 7  ;;  %v323_v8 = vld [vmem:[%s817_s3] sm:$0x1] (!%p222_p3)  ;;  %v311_v9 = vpack.i.b16 (!%p222_p3), %v309_v7, %v309_v7  ;;  %v690_v24 = vld [vmem:[%s815_s1 + $0x30] sm:$0xff] (!%p222_p3)   ;;  %v718_v25 = vmov (!%p222_p3), 0   ;;  %v691_v28 = vld [vmem:[%s815_s1 + $0x38] sm:$0xff] (!%p222_p3)  }
   0x9   : > { %639 = vmatprep.subr.bf16.mxu0 (!%p222_p3), %v716_v2  ;;  %v325_v10 = vpack.i.b16 (!%p222_p3), %v323_v8, %v323_v8  ;;  %v688_v15 = vld [vmem:[%s815_s1 + $0x20] sm:$0xff] (!%p222_p3)  }
   0xa   : > { %v315_v6 = vsub.s32 (!%p222_p3), 0, %v314_v4 }
   0xc   : > { %640 = vmatpush3.bf16.msra.mxu0 (!%p222_p3), %v685_v3  ;;  %v316_v12 = vrot.slane (!%p222_p3), %v311_v9, %v315_v6  ;;  %v330_v14 = vrot.slane (!%p222_p3), %v325_v10, %v315_v6 }
   0xd   : > { %641 = vmatprep.subr.bf16.mxu0 (!%p222_p3), %v716_v2 }
   0xe   : > { %s824_s23 = smov (!%p268_p4, %s602_s23), 3  ;;  %v606_v13 = vcombine.low %v316_v12, %v316_v12  ;;  %v607_v20 = vcombine.low %v330_v14, %v330_v14 }
   0xf   : > { %s603_s26 = sshll.u32 %s824_s23, 2 }
  0x10   : > { %642 = vmatpush3.bf16.msra.mxu0 %v686_v5  ;;  %s274_s9 = scalar_lea.vmem %s814_s0, %s603_s26  ;;  %s298_s24 = scalar_lea.vmem %s818_s4, %s603_s26 }
  0x11   : > { %643 = vmatprep.subr.bf16.mxu0 %v716_v2  ;;  %v307_v16 = vld [vmem:[%s274_s9] sm:$0xf]  ;;  %v308_v17 = vld [vmem:[%s274_s9 + $0x4] sm:$0xf] }
  0x12   : > { %v321_v18 = vmul.bf16 %v606_v13, %v307_v16  ;;  %v322_v19 = vmul.bf16 %v606_v13, %v308_v17 }
  0x14   : > { %644 = vmatpush3.bf16.msra.mxu0 %v687_v11  ;;  %v335_v22 = vadd.bf16 %v607_v20, %v321_v18  ;;  %v336_v23 = vadd.bf16 %v607_v20, %v322_v19 }
  0x15   : > { %645 = vmatprep.subr.bf16.mxu0 %v716_v2 }
  0x16   : > { %v337_v26 = vmax.bf16 %v718_v25, %v335_v22  ;;  %v338_v27 = vmax.bf16 %v718_v25, %v336_v23 }
  0x18   : > { %646 = vmatpush3.bf16.msra.mxu0 %v688_v15  ;;  %v608_v29 = vcombine.low %v337_v26, %v338_v27 }
  0x19   : > { %647 = vmatprep.subr.bf16.mxu0 %v716_v2 }
  0x1c   : > { %648 = vmatpush3.bf16.msra.mxu0 %v689_v21 }
  0x1d   : > { %649 = vmatprep.subr.bf16.mxu0 %v716_v2 }
  0x20   : > { %650 = vmatpush3.bf16.msra.mxu0 %v690_v24 }
  0x21   : > { %651 = vmatprep.subr.bf16.mxu0 %v716_v2 }
  0x24   : > { %652 = vmatpush3.bf16.msra.mxu0 %v691_v28 }
  0x27   : > { %654 = vmatmul.mubr.bf16.vlgmr.msra.gmra.mrb[0].mxu0 %v608_v29 }
  0xfa   : > { %v445_v30 = vpop.f32.mrb[0].mxu0 }
  0xfb   : > { %v655_v31 = vpop.f32.mrb[1].mxu0 }
  0xfc   : > { %v448_v32 = vpop.f32.mrb[2].mxu0 }
  0xfd   : > { %v626_v33 = vpack.c.bf16 %v448_v32, %v445_v30  ;;  %v656_v34 = vpop.f32.mrb[3].mxu0 }
  0xff   : > { %627 = vst [vmem:[%s298_s24] sm:$0xff] %v626_v33  }
 0x100 PF: > { %s14_s17 = sadd.s32 1, %s714_s17   ;;  %s819_s15 = smov %s710_s16 }
 0x101   : > { %p11_p5 = scmp.ge.s32.totalorder %s14_s17, 4   ;;  %s820_s16 = smov %s822_s18 }
 0x103   :  { %13 = sbr.rel (!%p11_p5) target bundleno = 2 (0x2), region = 83 }

// kernel: _lambda_.12
= control target key start
LH: loop header
LB: loop body
LE: loop exit
PB: predicated region body
PF: predicated region fallthrough
CT: control target
= control target key end

     0   :  { %s884_s21 = smov 0   ;;  %s886_s22 = smov 0   ;;  %s960_s0 = inlined_call_operand.vmem [shape: bf16[32,128], index: 0, kind: input, shape index: {}]   ;;  %s961_s1 = inlined_call_operand.vmem [shape: bf16[128,128], index: 1, kind: input, shape index: {}]   ;;  %s962_s2 = inlined_call_operand.vmem [shape: bf16[1,128], index: 2, kind: input, shape index: {}]   ;;  %s963_s3 = inlined_call_operand.vmem [shape: bf16[1,128], index: 3, kind: input, shape index: {}]   ;;  %s964_s4 = inlined_call_operand.vmem [shape: f32[1,128], index: 4, kind: input, shape index: {}]   ;;  %s965_s5 = inlined_call_operand.vmem [shape: f32[1,128], index: 5, kind: input, shape index: {}]   ;;  %s966_s6 = inlined_call_operand.vmem [shape: bf16[32,128], index: 6, kind: output, shape index: {}]  }
   0x1   :  { %s888_s23 = smov 0  }
   0x2 LB: > { %s35_s24 = sadd.s32 1, %s840_s22  ;;  %p729_p0 = scmp.ge.s32.totalorder %s844_s23, 1  ;;  %s844_s23 = sphi %s888_s23, %s16_s23   ;;  %s840_s22 = sphi %s886_s22, %s968_s22   ;;  %s836_s21 = sphi %s884_s21, %s967_s21  }
   0x3   : > { %p37_p1 = scmp.ge.s32.totalorder %s35_s24, 2  ;;  %p287_p2 = scmp.lt.s32.totalorder %s844_s23, 3 }
   0x5   : > { %s970_s24 = smov (%p37_p1, %s35_s24), 0  ;;  %p288_p3 = pnand %p729_p0, %p287_p2 }
   0x6   : > { %v814_v0 = vld [vmem:[%s961_s1] sm:$0xff] (!%p288_p3)   ;;  %v395_v1 = vlaneseq (!%p288_p3)  ;;  %v846_v2 = vmov (!%p288_p3), 0.0   ;;  %v815_v3 = vld [vmem:[%s961_s1 + $0x8] sm:$0xff] (!%p288_p3)   ;;  %vm847_vm0 = vmmov (!%p288_p3), 0   ;;  %s730_s29 = sshll.u32 (!%p288_p3), %s836_s21, 1  ;;  %v816_v5 = vld [vmem:[%s961_s1 + $0x10] sm:$0xff] (!%p288_p3)  }
   0x7   : > { %291 = sbr.rel (%p288_p3) target bundleno = 262 (0x106), region = 44  ;;  %767 = vmatprep.subr.bf16.mxu0 (!%p288_p3), %v846_v2  ;;  %783 = vmatprep.mubr.msk.bf16.mxu0 (!%p288_p3), %vm847_vm0, %v846_v2  ;;  %p344_p4 = scmp.lt.s32.totalorder (!%p288_p3), %s730_s29, 3  ;;  %v391_v7 = vld [vmem:[%s962_s2] sm:$0x1] (!%p288_p3)  ;;  %v817_v11 = vld [vmem:[%s961_s1 + $0x18] sm:$0xff] (!%p288_p3)   ;;  %v819_v21 = vld [vmem:[%s961_s1 + $0x28] sm:$0xff] (!%p288_p3)  }
   0x8   : > { %768 = vmatpush3.bf16.msra.mxu0 (!%p288_p3), %v814_v0  ;;  %v396_v4 = vshrl.u32 (!%p288_p3), %v395_v1, 7  ;;  %v405_v8 = vld [vmem:[%s963_s3] sm:$0x1] (!%p288_p3)  ;;  %v393_v9 = vpack.i.b16 (!%p288_p3), %v391_v7, %v391_v7  ;;  %v820_v24 = vld [vmem:[%s961_s1 + $0x30] sm:$0xff] (!%p288_p3)   ;;  %v848_v25 = vmov (!%p288_p3), 0   ;;  %v821_v28 = vld [vmem:[%s961_s1 + $0x38] sm:$0xff] (!%p288_p3)  }
   0x9   : > { %769 = vmatprep.subr.bf16.mxu0 (!%p288_p3), %v846_v2  ;;  %v407_v10 = vpack.i.b16 (!%p288_p3), %v405_v8, %v405_v8  ;;  %v818_v15 = vld [vmem:[%s961_s1 + $0x20] sm:$0xff] (!%p288_p3)  }
   0xa   : > { %v397_v6 = vsub.s32 (!%p288_p3), 0, %v396_v4  ;;  %v745_v30 = vld [vmem:[%s964_s4] ss:$0 sm:$0xff] (!%p288_p3) }
   0xb   : > { %v746_v32 = vld [vmem:[%s965_s5] ss:$0 sm:$0xff] (!%p288_p3) }
   0xc   : > { %770 = vmatpush3.bf16.msra.mxu0 (!%p288_p3), %v815_v3  ;;  %v398_v12 = vrot.slane (!%p288_p3), %v393_v9, %v397_v6  ;;  %v412_v14 = vrot.slane (!%p288_p3), %v407_v10, %v397_v6 }
   0xd   : > { %771 = vmatprep.subr.bf16.mxu0 (!%p288_p3), %v846_v2 }
   0xe   : > { %s972_s29 = smov (!%p344_p4, %s730_s29), 3  ;;  %v734_v13 = vcombine.low %v398_v12, %v398_v12  ;;  %v735_v20 = vcombine.low %v412_v14, %v412_v14 }
   0xf   : > { %s731_s8 = sshll.u32 %s972_s29, 2 }
  0x10   : > { %772 = vmatpush3.bf16.msra.mxu0 %v816_v5  ;;  %s350_s17 = scalar_lea.vmem %s960_s0, %s731_s8  ;;  %s380_s13 = scalar_lea.vmem %s966_s6, %s731_s8 }
  0x11   : > { %773 = vmatprep.subr.bf16.mxu0 %v846_v2  ;;  %v389_v16 = vld [vmem:[%s350_s17] sm:$0xf]  ;;  %v390_v17 = vld [vmem:[%s350_s17 + $0x4] sm:$0xf] }
  0x12   : > { %v403_v18 = vmul.bf16 %v734_v13, %v389_v16  ;;  %v404_v19 = vmul.bf16 %v734_v13, %v390_v17 }
  0x14   : > { %774 = vmatpush3.bf16.msra.mxu0 %v817_v11  ;;  %v417_v22 = vadd.bf16 %v735_v20, %v403_v18  ;;  %v418_v23 = vadd.bf16 %v735_v20, %v404_v19 }
  0x15   : > { %775 = vmatprep.subr.bf16.mxu0 %v846_v2 }
  0x16   : > { %v419_v26 = vmax.bf16 %v848_v25, %v417_v22  ;;  %v420_v27 = vmax.bf16 %v848_v25, %v418_v23 }
  0x18   : > { %776 = vmatpush3.bf16.msra.mxu0 %v818_v15  ;;  %v736_v29 = vcombine.low %v419_v26, %v420_v27 }
  0x19   : > { %777 = vmatprep.subr.bf16.mxu0 %v846_v2 }
  0x1c   : > { %778 = vmatpush3.bf16.msra.mxu0 %v819_v21 }
  0x1d   : > { %779 = vmatprep.subr.bf16.mxu0 %v846_v2 }
  0x20   : > { %780 = vmatpush3.bf16.msra.mxu0 %v820_v24 }
  0x21   : > { %781 = vmatprep.subr.bf16.mxu0 %v846_v2 }
  0x24   : > { %782 = vmatpush3.bf16.msra.mxu0 %v821_v28 }
  0x27   : > { %784 = vmatmul.mubr.bf16.vlgmr.msra.gmra.mrb[0].mxu0 %v736_v29 }
  0xfa   : > { %v527_v31 = vpop.f32.mrb[0].mxu0 }
  0xfb   : > { %v550_v33 = vmul.f32 %v745_v30, %v527_v31  ;;  %v785_v34 = vpop.f32.mrb[1].mxu0 }
  0xfc   : > { %v530_v35 = vpop.f32.mrb[2].mxu0 }
  0xfd   : > { %v559_v36 = vadd.f32 %v746_v32, %v550_v33  ;;  %v551_v37 = vmul.f32 %v745_v30, %v530_v35  ;;  %v786_v38 = vpop.f32.mrb[3].mxu0 }
  0xff   : > { %v560_v39 = vadd.f32 %v746_v32, %v551_v37  ;;  %v561_v40 = vmax.f32 %v559_v36, 0.0 }
 0x101   : > { %v562_v41 = vmax.f32 %v560_v39, 0.0 }
 0x103   : > { %v756_v42 = vpack.c.bf16 %v562_v41, %v561_v40 }
 0x105   : > { %757 = vst [vmem:[%s380_s13] sm:$0xff] %v756_v42  }
 0x106 PF: > { %s16_s23 = sadd.s32 1, %s844_s23   ;;  %s967_s21 = smov %s840_s22 }
 0x107   : > { %p13_p5 = scmp.ge.s32.totalorder %s16_s23, 4   ;;  %s968_s22 = smov %s970_s24 }
 0x109   :  { %15 = sbr.rel (!%p13_p5) target bundleno = 2 (0x2), region = 97 }

// kernel: _lambda_.11
= control target key start
LH: loop header
LB: loop body
LE: loop exit
PB: predicated region body
PF: predicated region fallthrough
CT: control target
= control target key end

     0   :  { %s1039_s15 = smov 0   ;;  %s1041_s16 = smov 0   ;;  %s1140_s0 = inlined_call_operand.vmem [shape: bf16[128,256], index: 0, kind: input, shape index: {}]   ;;  %s1141_s1 = inlined_call_operand.vmem [shape: bf16[256,128], index: 1, kind: input, shape index: {}]   ;;  %s1142_s2 = inlined_call_operand.vmem [shape: f32[1,128], index: 2, kind: input, shape index: {}]   ;;  %s1143_s3 = inlined_call_operand.vmem [shape: f32[1,128], index: 3, kind: input, shape index: {}]   ;;  %s1144_s4 = inlined_call_operand.vmem [shape: bf16[128,128], index: 4, kind: output, shape index: {}]  }
   0x1   :  { %s1043_s17 = smov 0  }
   0x2 LB: > { %s33_s18 = sadd.s32 1, %s1008_s16  ;;  %p808_p0 = scmp.ge.s32.totalorder %s1012_s17, 1  ;;  %s1012_s17 = sphi %s1043_s17, %s14_s17   ;;  %s1008_s16 = sphi %s1041_s16, %s1146_s16   ;;  %s1004_s15 = sphi %s1039_s15, %s1145_s15  }
   0x3   : > { %p35_p1 = scmp.ge.s32.totalorder %s33_s18, 2  ;;  %p224_p2 = scmp.lt.s32.totalorder %s1012_s17, 3 }
   0x5   : > { %s1148_s18 = smov (%p35_p1, %s33_s18), 0  ;;  %p225_p3 = pnand %p808_p0, %p224_p2 }
   0x6   : > { %v962_v0 = vld [vmem:[%s1141_s1 + $0x40] sm:$0xff] (!%p225_p3)   ;;  %s809_s21 = sshll.u32 (!%p225_p3), %s1004_s15, 3  ;;  %v964_v2 = vld [vmem:[%s1141_s1 + $0x48] sm:$0xff] (!%p225_p3)   ;;  %v966_v4 = vld [vmem:[%s1141_s1 + $0x50] sm:$0xff] (!%p225_p3)  }
   0x7   : > { %228 = sbr.rel (%p225_p3) target bundleno = 274 (0x112), region = 36  ;;  %v963_v1 = vld [vmem:[%s1141_s1] sm:$0xff] (!%p225_p3)   ;;  %882 = vmatprep.subr.bf16.mxu0 (!%p225_p3), %v962_v0  ;;  %922 = vmatprep.subr.bf16.mxu1 (!%p225_p3), %v962_v0  ;;  %v965_v3 = vld [vmem:[%s1141_s1 + $0x8] sm:$0xff] (!%p225_p3)   ;;  %p274_p4 = scmp.lt.s32.totalorder (!%p225_p3), %s809_s21, 15  ;;  %v967_v5 = vld [vmem:[%s1141_s1 + $0x10] sm:$0xff] (!%p225_p3)  }
   0x8   : > { %883 = vmatpush3.bf16.msra.mxu0 (!%p225_p3), %v963_v1  ;;  %930 = vmatpush3.bf16.msra.mxu1 (!%p225_p3), %v963_v1  ;;  %v968_v6 = vld [vmem:[%s1141_s1 + $0x58] sm:$0xff] (!%p225_p3)   ;;  %v970_v8 = vld [vmem:[%s1141_s1 + $0x60] sm:$0xff] (!%p225_p3)   ;;  %v972_v10 = vld [vmem:[%s1141_s1 + $0x68] sm:$0xff] (!%p225_p3)  }
   0x9   : > { %884 = vmatprep.subr.bf16.mxu0 (!%p225_p3), %v964_v2  ;;  %923 = vmatprep.subr.bf16.mxu1 (!%p225_p3), %v964_v2  ;;  %v969_v7 = vld [vmem:[%s1141_s1 + $0x18] sm:$0xff] (!%p225_p3)   ;;  %v971_v9 = vld [vmem:[%s1141_s1 + $0x20] sm:$0xff] (!%p225_p3)   ;;  %v973_v13 = vld [vmem:[%s1141_s1 + $0x28] sm:$0xff] (!%p225_p3)  }
   0xa   : > { %v974_v14 = vld [vmem:[%s1141_s1 + $0x70] sm:$0xff] (!%p225_p3)   ;;  %v976_v16 = vld [vmem:[%s1141_s1 + $0x78] sm:$0xff] (!%p225_p3)   ;;  %v838_v27 = vld [vmem:[%s1142_s2] ss:$0 sm:$0xff] (!%p225_p3) }
   0xb   : > { %v975_v15 = vld [vmem:[%s1141_s1 + $0x30] sm:$0xff] (!%p225_p3)   ;;  %v977_v17 = vld [vmem:[%s1141_s1 + $0x38] sm:$0xff] (!%p225_p3)   ;;  %v839_v33 = vld [vmem:[%s1143_s3] ss:$0 sm:$0xff] (!%p225_p3) }
   0xc   : > { %885 = vmatpush3.bf16.msra.mxu0 (!%p225_p3), %v965_v3  ;;  %931 = vmatpush3.bf16.msra.mxu1 (!%p225_p3), %v965_v3 }
   0xd   : > { %886 = vmatprep.subr.bf16.mxu0 (!%p225_p3), %v966_v4  ;;  %924 = vmatprep.subr.bf16.mxu1 (!%p225_p3), %v966_v4 }
   0xe   : > { %s1150_s21 = smov (!%p274_p4, %s809_s21), 15 }
   0xf   : > { %s850_s10 = sshll.u32 %s1150_s21, 3  ;;  %s813_s12 = sshll.u32 %s1150_s21, 2 }
  0x10   : > { %887 = vmatpush3.bf16.msra.mxu0 %v967_v5  ;;  %932 = vmatpush3.bf16.msra.mxu1 %v967_v5  ;;  %s1090_s15 = scalar_lea.vmem %s1140_s0, %s850_s10 }
  0x11   : > { %888 = vmatprep.subr.bf16.mxu0 %v968_v6  ;;  %925 = vmatprep.subr.bf16.mxu1 %v968_v6  ;;  %v980_v11 = vld [vmem:[%s1090_s15 + $0x4] ss:$8 sps:$4 sm:$0xff]   ;;  %v978_v18 = vld [vmem:[%s1090_s15] ss:$8 sps:$4 sm:$0xff]   ;;  %v984_v20 = vld [vmem:[%s1090_s15 + $0x14] ss:$8 sps:$4 sm:$0xff]  }
  0x12   : > { %v983_v12 = vld [vmem:[%s1090_s15 + $0x24] ss:$8 sps:$4 sm:$0xff]   ;;  %537 = vmatprep.mubr.bf16.mxu0 %v980_v11  ;;  %v981_v19 = vld [vmem:[%s1090_s15 + $0x20] ss:$8 sps:$4 sm:$0xff]   ;;  %v986_v21 = vld [vmem:[%s1090_s15 + $0x34] ss:$8 sps:$4 sm:$0xff]  }
  0x13   : > { %553 = vmatprep.mubr.bf16.mxu1 %v983_v12  ;;  %v988_v22 = vld [vmem:[%s1090_s15 + $0x10] ss:$8 sps:$4 sm:$0xff]  }
  0x14   : > { %889 = vmatpush3.bf16.msra.mxu0 %v969_v7  ;;  %933 = vmatpush3.bf16.msra.mxu1 %v969_v7  ;;  %v989_v23 = vld [vmem:[%s1090_s15 + $0x30] ss:$8 sps:$4 sm:$0xff]   ;;  %s306_s15 = scalar_lea.vmem %s1144_s4, %s813_s12 }
  0x15   : > { %890 = vmatprep.subr.bf16.mxu0 %v970_v8  ;;  %926 = vmatprep.subr.bf16.mxu1 %v970_v8 }
  0x18   : > { %891 = vmatpush3.bf16.msra.mxu0 %v971_v9  ;;  %934 = vmatpush3.bf16.msra.mxu1 %v971_v9 }
  0x19   : > { %892 = vmatprep.subr.bf16.mxu0 %v972_v10  ;;  %927 = vmatprep.subr.bf16.mxu1 %v972_v10 }
  0x1c   : > { %893 = vmatpush3.bf16.msra.mxu0 %v973_v13  ;;  %935 = vmatpush3.bf16.msra.mxu1 %v973_v13 }
  0x1d   : > { %894 = vmatprep.subr.bf16.mxu0 %v974_v14  ;;  %928 = vmatprep.subr.bf16.mxu1 %v974_v14 }
  0x20   : > { %895 = vmatpush3.bf16.msra.mxu0 %v975_v15  ;;  %936 = vmatpush3.bf16.msra.mxu1 %v975_v15 }
  0x21   : > { %896 = vmatprep.subr.bf16.mxu0 %v976_v16  ;;  %929 = vmatprep.subr.bf16.mxu1 %v976_v16 }
  0x24   : > { %897 = vmatpush3.bf16.msra.mxu0 %v977_v17  ;;  %937 = vmatpush3.bf16.msra.mxu1 %v977_v17 }
  0x27   : > { %538 = vmatmul.mubr.bf16.vlgmr.msra.gmra.mrb[0].mxu0 %v978_v18  ;;  %554 = vmatmul.mubr.bf16.vlgmr.msra.gmra.mrb[0].mxu1 %v981_v19 }
  0x28   : > { %545 = vmatprep.mubr.bf16.mxu0 %v984_v20  ;;  %561 = vmatprep.mubr.bf16.mxu1 %v986_v21 }
  0x2f   : > { %546 = vmatmul.mubr.bf16.gmra.mrb[4].mxu0 %v988_v22  ;;  %562 = vmatmul.mubr.bf16.gmra.mrb[4].mxu1 %v989_v23 }
  0xfa   : > { %v898_v24 = vpop.f32.mrb[0].mxu0  ;;  %v910_v25 = vpop.f32.mrb[0].mxu1 }
  0xfb   : > { %v899_v26 = vpop.f32.mrb[1].mxu0  ;;  %v911_v28 = vpop.f32.mrb[1].mxu1 }
  0xfc   : > { %v900_v29 = vadd.f32 %v899_v26, %v898_v24  ;;  %v912_v30 = vadd.f32 %v911_v28, %v910_v25  ;;  %v901_v31 = vpop.f32.mrb[2].mxu0  ;;  %v913_v32 = vpop.f32.mrb[2].mxu1 }
  0xfd   : > { %v902_v34 = vpop.f32.mrb[3].mxu0  ;;  %v914_v35 = vpop.f32.mrb[3].mxu1 }
  0xfe   : > { %v604_v36 = vmul.f32 %v900_v29, %v838_v27  ;;  %v608_v37 = vmul.f32 %v912_v30, %v838_v27  ;;  %v903_v38 = vadd.f32 %v902_v34, %v901_v31  ;;  %v915_v39 = vadd.f32 %v914_v35, %v913_v32 }
 0x100   : > { %v619_v40 = vadd.f32 %v839_v33, %v604_v36  ;;  %v623_v41 = vadd.f32 %v839_v33, %v608_v37  ;;  %v605_v42 = vmul.f32 %v903_v38, %v838_v27  ;;  %v609_v43 = vmul.f32 %v915_v39, %v838_v27 }
 0x102   : > { %v620_v44 = vadd.f32 %v839_v33, %v605_v42  ;;  %v624_v45 = vadd.f32 %v839_v33, %v609_v43  ;;  %v904_v46 = vpop.f32.mrb[4].mxu0  ;;  %v916_v47 = vpop.f32.mrb[4].mxu1  ;;  %v627_v48 = vmax.f32 %v619_v40, 0.0  ;;  %v631_v49 = vmax.f32 %v623_v41, 0.0 }
 0x103   : > { %v905_v50 = vpop.f32.mrb[5].mxu0  ;;  %v917_v51 = vpop.f32.mrb[5].mxu1 }
 0x104   : > { %v628_v52 = vmax.f32 %v620_v44, 0.0  ;;  %v632_v53 = vmax.f32 %v624_v45, 0.0  ;;  %v906_v54 = vadd.f32 %v905_v50, %v904_v46  ;;  %v918_v55 = vadd.f32 %v917_v51, %v916_v47  ;;  %v907_v56 = vpop.f32.mrb[6].mxu0  ;;  %v919_v57 = vpop.f32.mrb[6].mxu1 }
 0x105   : > { %v908_v58 = vpop.f32.mrb[7].mxu0  ;;  %v920_v59 = vpop.f32.mrb[7].mxu1 }
 0x106   : > { %v862_v60 = vpack.c.bf16 %v628_v52, %v627_v48  ;;  %v872_v61 = vpack.c.bf16 %v632_v53, %v631_v49  ;;  %v606_v62 = vmul.f32 %v906_v54, %v838_v27  ;;  %v610_v63 = vmul.f32 %v918_v55, %v838_v27 }
 0x107   : > { %v909_v0 = vadd.f32 %v908_v58, %v907_v56  ;;  %v921_v1 = vadd.f32 %v920_v59, %v919_v57 }
 0x108   : > { %863 = vst [vmem:[%s306_s15] sm:$0xff] %v862_v60   ;;  %880 = vst [vmem:[%s306_s15 + $0x10] sm:$0xff] %v872_v61   ;;  %v621_v2 = vadd.f32 %v839_v33, %v606_v62  ;;  %v625_v3 = vadd.f32 %v839_v33, %v610_v63 }
 0x109   : > { %v607_v4 = vmul.f32 %v909_v0, %v838_v27  ;;  %v611_v5 = vmul.f32 %v921_v1, %v838_v27 }
 0x10a   : > { %v629_v8 = vmax.f32 %v621_v2, 0.0  ;;  %v633_v9 = vmax.f32 %v625_v3, 0.0 }
 0x10b   : > { %v622_v6 = vadd.f32 %v839_v33, %v607_v4  ;;  %v626_v7 = vadd.f32 %v839_v33, %v611_v5 }
 0x10d   : > { %v630_v10 = vmax.f32 %v622_v6, 0.0  ;;  %v634_v11 = vmax.f32 %v626_v7, 0.0 }
 0x10f   : > { %v867_v12 = vpack.c.bf16 %v630_v10, %v629_v8  ;;  %v877_v13 = vpack.c.bf16 %v634_v11, %v633_v9 }
 0x111   : > { %879 = vst [vmem:[%s306_s15 + $0x8] sm:$0xff] %v867_v12   ;;  %881 = vst [vmem:[%s306_s15 + $0x18] sm:$0xff] %v877_v13  }
 0x112 PF: > { %s14_s17 = sadd.s32 1, %s1012_s17   ;;  %s1145_s15 = smov %s1008_s16 }
 0x113   : > { %p11_p5 = scmp.ge.s32.totalorder %s14_s17, 4   ;;  %s1146_s16 = smov %s1148_s18 }
 0x115   :  { %13 = sbr.rel (!%p11_p5) target bundleno = 2 (0x2), region = 83 }

// kernel: _lambda_.13
= control target key start
LH: loop header
LB: loop body
LE: loop exit
PB: predicated region body
PF: predicated region fallthrough
CT: control target
= control target key end

     0   :  { %s783_s9 = smov 0   ;;  %s785_s10 = smov 0   ;;  %s905_s0 = inlined_call_operand.vmem [shape: bf16[32,512], index: 0, kind: input, shape index: {}]   ;;  %s906_s1 = inlined_call_operand.vmem [shape: bf16[512,128], index: 1, kind: input, shape index: {}]   ;;  %s907_s2 = inlined_call_operand.vmem [shape: bf16[32,128], index: 2, kind: output, shape index: {}]  }
   0x1   :  { %s787_s11 = smov 0   ;;  %s789_s12 = smov 0  }
   0x2   :  { %s791_s13 = smov 0   ;;  %s793_s14 = smov 0  }
   0x3   :  { %s795_s15 = smov 0  }
   0x4 LB: > { %s24_s16 = sadd.s32 1, %s757_s13  ;;  %s31_s17 = sadd.s32 1, %s761_s14  ;;  %s765_s15 = sphi %s795_s15, %s12_s15   ;;  %s761_s14 = sphi %s793_s14, %s913_s14   ;;  %s757_s13 = sphi %s791_s13, %s912_s13   ;;  %s753_s12 = sphi %s789_s12, %s911_s12   ;;  %s749_s11 = sphi %s787_s11, %s910_s11   ;;  %s745_s10 = sphi %s785_s10, %s909_s10   ;;  %s741_s9 = sphi %s783_s9, %s908_s9  }
   0x5   : > { %p25_p0 = scmp.ge.s32.totalorder %s24_s16, 2  ;;  %p47_p1 = scmp.ne.s32.totalorder %s745_s10, %s741_s9 }
   0x6   : > { %p48_p2 = scmp.eq.s32.totalorder %s765_s15, 0  ;;  %s40_s21 = sadd.s32 1, %s745_s10 }
   0x7   : > { %s915_s16 = smov (%p25_p0, %s24_s16), 0  ;;  %s917_s17 = smov (!%p25_p0, %s31_s17), %s761_s14 }
   0x8   : > { %p49_p3 = por %p48_p2, %p47_p1  ;;  %p33_p4 = scmp.ge.s32.totalorder %s917_s17, 2 }
   0x9   : > { %s36_s18 = ssub.s32 %s757_s13, %s915_s16  ;;  %p569_p6 = scmp.ge.s32.totalorder %s765_s15, 4 }
   0xa   : > { %s919_s17 = smov (%p33_p4, %s917_s17), 0 }
   0xb   : > { %s35_s19 = ssub.s32 %s761_s14, %s919_s17  ;;  %129 = sbr.rel (%p569_p6) target bundleno = 26 (0x1a), region = 16 }
   0xc   : > { %s37_s20 = sor.u32 %s36_s18, %s35_s19 }
   0xd   : > { %p38_p5 = scmp.eq.s32.totalorder %s37_s20, 0 }
   0xf   : > { %s834_s22 = scalar_select %p38_p5, %s745_s10, %s40_s21  }
  0x12   : > { %132 = sbr.rel (!%p49_p3) target bundleno = 26 (0x1a), region = 20  ;;  %s134_s23 = sand.u32 (%p49_p3), 1, %s745_s10  }
  0x13   : > { %s572_s24 = sshll.u32 (%p49_p3), %s757_s13, 1  ;;  %s570_s25 = sshll.u32 (%p49_p3), %s134_s23, 4 }
  0x14   : > { %s605_s26 = sshll.u32 (%p49_p3), %s761_s14, 3  ;;  %s136_s4 = scalar_lea.vmem (%p49_p3), [#allocation3], %s570_s25 }
  0x15   : > { %s140_s27 = sadd.s32 (%p49_p3), %s605_s26, %s572_s24 }
  0x16   : > { %s574_s28 = sshll.u32 (%p49_p3), %s140_s27, 2 }
  0x17   : > { %s142_s3 = scalar_lea.vmem (%p49_p3), %s905_s0, %s574_s28 }
  0x18   : > { %v172_v0 = vld [vmem:[%s142_s3] sm:$0xff] (%p49_p3)  ;;  %v174_v1 = vld [vmem:[%s142_s3 + $0x10] sm:$0xff] (%p49_p3) }
  0x19   : > { %173 = vst [vmem:[%s136_s4] sm:$0xff] %v172_v0  ;;  %175 = vst [vmem:[%s136_s4 + $0x8] sm:$0xff] %v174_v1 }
  0x1a PF: > { %p575_p7 = scmp.ge.s32.totalorder %s765_s15, 1  ;;  %p192_p8 = scmp.lt.s32.totalorder %s765_s15, 5 }
  0x1c   : > { %p193_p9 = pnand %p575_p7, %p192_p8 }
  0x1d   : > { %s199_s5 = sand.u32 (!%p193_p9), 1, %s741_s9   ;;  %s577_s6 = sshll.u32 (!%p193_p9), %s749_s11, 5 }
  0x1e   : > { %196 = sbr.rel (%p193_p9) target bundleno = 310 (0x136), region = 62  ;;  %s847_s7 = sshll.u32 (!%p193_p9), %s199_s5, 4 }
  0x1f   : > { %p234_p10 = scmp.lt.s32.totalorder (!%p193_p9), %s577_s6, 63  ;;  %s579_s8 = sshll.u32 (!%p193_p9), %s753_s12, 1 }
  0x20   : > { %p243_p11 = scmp.lt.s32.totalorder (!%p193_p9), %s579_s8, 3  ;;  %s201_s26 = scalar_lea.vmem (!%p193_p9), [#allocation3], %s847_s7 }
  0x21   : > { %p581_p12 = scmp.ne.s32.totalorder (!%p193_p9), %s749_s11, 0 }
  0x25   : > { %s921_s6 = smov (!%p234_p10, %s577_s6), 63  ;;  %s923_s8 = smov (!%p243_p11, %s579_s8), 3 }
  0x26   : > { %s578_s18 = sshll.u32 %s921_s6, 2  ;;  %s580_s23 = sshll.u32 %s923_s8, 2  ;;  %v767_v2 = vmov (!%p581_p12), 0.0  }
  0x27   : > { %s853_s21 = scalar_lea.vmem %s906_s1, %s578_s18  ;;  %s858_s9 = scalar_lea.vmem %s907_s2, %s580_s23  ;;  %256 = vst [vmem:[#allocation2] sm:$0xff] (!%p581_p12), %v767_v2  ;;  %257 = vst [vmem:[#allocation2 + $0x8] sm:$0xff] (!%p581_p12), %v767_v2 }
  0x28   : > { %255 = sbr.rel (%p581_p12) target bundleno = 47 (0x2f), region = 70 }
  0x2f PF: > { %v692_v3 = vld [vmem:[%s853_s21 + $0x40] sm:$0xff]   ;;  %v694_v5 = vld [vmem:[%s853_s21 + $0x48] sm:$0xff]   ;;  %v696_v7 = vld [vmem:[%s853_s21 + $0x50] sm:$0xff]   ;;  %p600_p13 = scmp.ne.s32.totalorder %s749_s11, 1 }
  0x30   : > { %v693_v4 = vld [vmem:[%s853_s21] sm:$0xff]   ;;  %613 = vmatprep.subr.bf16.mxu0 %v692_v3  ;;  %v695_v6 = vld [vmem:[%s853_s21 + $0x8] sm:$0xff]   ;;  %v697_v8 = vld [vmem:[%s853_s21 + $0x10] sm:$0xff]  }
  0x31   : > { %614 = vmatpush3.bf16.msra.mxu0 %v693_v4  ;;  %v698_v9 = vld [vmem:[%s853_s21 + $0x58] sm:$0xff]   ;;  %v700_v11 = vld [vmem:[%s853_s21 + $0x60] sm:$0xff]   ;;  %v702_v13 = vld [vmem:[%s853_s21 + $0x68] sm:$0xff]  }
  0x32   : > { %615 = vmatprep.subr.bf16.mxu0 %v694_v5  ;;  %v699_v10 = vld [vmem:[%s853_s21 + $0x18] sm:$0xff]   ;;  %v701_v12 = vld [vmem:[%s853_s21 + $0x20] sm:$0xff]   ;;  %v703_v15 = vld [vmem:[%s853_s21 + $0x28] sm:$0xff]  }
  0x33   : > { %v710_v14 = vld [vmem:[%s201_s26 + $0x4] ss:$8 sps:$4 sm:$0xff]   ;;  %v708_v20 = vld [vmem:[%s201_s26] ss:$8 sps:$4 sm:$0xff]  }
  0x34   : > { %432 = vmatprep.mubr.bf16.mxu0 %v710_v14  ;;  %v704_v16 = vld [vmem:[%s853_s21 + $0x70] sm:$0xff]   ;;  %v706_v18 = vld [vmem:[%s853_s21 + $0x78] sm:$0xff]   ;;  %v260_v22 = vld [vmem:[#allocation2] sm:$0xff] }
  0x35   : > { %616 = vmatpush3.bf16.msra.mxu0 %v695_v6  ;;  %v705_v17 = vld [vmem:[%s853_s21 + $0x30] sm:$0xff]   ;;  %v707_v19 = vld [vmem:[%s853_s21 + $0x38] sm:$0xff]   ;;  %v261_v26 = vld [vmem:[#allocation2 + $0x8] sm:$0xff] }
  0x36   : > { %617 = vmatprep.subr.bf16.mxu0 %v696_v7 }
  0x39   : > { %618 = vmatpush3.bf16.msra.mxu0 %v697_v8 }
  0x3a   : > { %619 = vmatprep.subr.bf16.mxu0 %v698_v9 }
  0x3d   : > { %620 = vmatpush3.bf16.msra.mxu0 %v699_v10 }
  0x3e   : > { %621 = vmatprep.subr.bf16.mxu0 %v700_v11 }
  0x41   : > { %622 = vmatpush3.bf16.msra.mxu0 %v701_v12 }
  0x42   : > { %623 = vmatprep.subr.bf16.mxu0 %v702_v13 }
  0x45   : > { %624 = vmatpush3.bf16.msra.mxu0 %v703_v15 }
  0x46   : > { %625 = vmatprep.subr.bf16.mxu0 %v704_v16 }
  0x49   : > { %626 = vmatpush3.bf16.msra.mxu0 %v705_v17 }
  0x4a   : > { %627 = vmatprep.subr.bf16.mxu0 %v706_v18 }
  0x4d   : > { %628 = vmatpush3.bf16.msra.mxu0 %v707_v19 }
  0x50   : > { %433 = vmatmul.mubr.bf16.vlgmr.msra.gmra.mrb[0].mxu0 %v708_v20 }
 0x123   : > { %v629_v21 = vpop.f32.mrb[0].mxu0 }
 0x124   : > { %v630_v23 = vpop.f32.mrb[1].mxu0 }
 0x125   : > { %v631_v24 = vadd.f32 %v630_v23, %v629_v21  ;;  %v632_v25 = vpop.f32.mrb[2].mxu0  ;;  %448 = sbr.rel (%p600_p13) target bundleno = 310 (0x136), region = 74 }
 0x126   : > { %v633_v27 = vpop.f32.mrb[3].mxu0 }
 0x127   : > { %v441_v28 = vadd.f32 %v631_v24, %v260_v22  ;;  %v634_v29 = vadd.f32 %v633_v27, %v632_v25 }
 0x129   : > { %443 = vst [vmem:[#allocation2] sm:$0xff] %v441_v28  ;;  %v442_v30 = vadd.f32 %v634_v29, %v261_v26 }
 0x12b   : > { %444 = vst [vmem:[#allocation2 + $0x8] sm:$0xff] %v442_v30 }
 0x130   : > { %v449_v31 = vld [vmem:[#allocation2] sm:$0xff] }
 0x132   : > { %v450_v32 = vld [vmem:[#allocation2 + $0x8] sm:$0xff] }
 0x133   : > { %v611_v33 = vpack.c.bf16 %v450_v32, %v449_v31 }
 0x135   : > { %612 = vst [vmem:[%s858_s9] sm:$0xff] %v611_v33  }
 0x136 PF: > { %s12_s15 = sadd.s32 1, %s765_s15   ;;  %s908_s9 = smov %s745_s10 }
 0x137   : > { %p9_p0 = scmp.ge.s32.totalorder %s12_s15, 6   ;;  %s909_s10 = smov %s834_s22 }
 0x138   : > { %s910_s11 = smov %s757_s13  ;;  %s911_s12 = smov %s761_s14 }
 0x139   : > { %s912_s13 = smov %s915_s16  ;;  %s913_s14 = smov %s919_s17 }
 0x13a   :  { %11 = sbr.rel (!%p9_p0) target bundleno = 4 (0x4), region = 112 }

// kernel: _lambda_.17
= control target key start
LH: loop header
LB: loop body
LE: loop exit
PB: predicated region body
PF: predicated region fallthrough
CT: control target
= control target key end

     0   :  { %v36_v0 = vlaneseq  ;;  %v280_v1 = vmov 0.0   ;;  %vm281_vm0 = vmmov 0   ;;  %v282_v25 = vmov 0   ;;  %s363_s1 = inlined_call_operand.vmem [shape: bf16[128,128], index: 1, kind: input, shape index: {}]   ;;  %s364_s2 = inlined_call_operand.vmem [shape: bf16[1,128], index: 2, kind: input, shape index: {}]   ;;  %s365_s3 = inlined_call_operand.vmem [shape: bf16[1,128], index: 3, kind: input, shape index: {}]   ;;  %s366_s0 = inlined_call_operand.vmem [shape: bf16[16,128], index: 0, kind: input, shape index: {}]   ;;  %s367_s4 = inlined_call_operand.vmem [shape: f32[1,128], index: 4, kind: input, shape index: {}]   ;;  %s368_s5 = inlined_call_operand.vmem [shape: f32[1,128], index: 5, kind: input, shape index: {}]   ;;  %s369_s6 = inlined_call_operand.vmem [shape: bf16[16,128], index: 6, kind: output, shape index: {}]  }
   0x1   :  { %249 = vmatprep.subr.bf16.mxu0 %v280_v1  ;;  %v272_v2 = vld [vmem:[%s363_s1] sm:$0xff]   ;;  %265 = vmatprep.mubr.msk.bf16.mxu0 %vm281_vm0, %v280_v1  ;;  %v273_v3 = vld [vmem:[%s363_s1 + $0x8] sm:$0xff]   ;;  %v274_v5 = vld [vmem:[%s363_s1 + $0x10] sm:$0xff]  }
   0x2   :  { %250 = vmatpush3.bf16.msra.mxu0 %v272_v2  ;;  %v37_v4 = vshrl.u32 %v36_v0, 7  ;;  %v32_v7 = vld [vmem:[%s364_s2] sm:$0x1]  ;;  %v275_v10 = vld [vmem:[%s363_s1 + $0x18] sm:$0xff]   ;;  %v31_v17 = vld [vmem:[%s366_s0 + $0x4] sm:$0xf] }
   0x3   :  { %251 = vmatprep.subr.bf16.mxu0 %v280_v1  ;;  %v34_v8 = vpack.i.b16 %v32_v7, %v32_v7  ;;  %v46_v9 = vld [vmem:[%s365_s3] sm:$0x1]  ;;  %v277_v21 = vld [vmem:[%s363_s1 + $0x28] sm:$0xff]   ;;  %v278_v24 = vld [vmem:[%s363_s1 + $0x30] sm:$0xff]  }
   0x4   :  { %v38_v6 = vsub.s32 0, %v37_v4  ;;  %v48_v11 = vpack.i.b16 %v46_v9, %v46_v9  ;;  %v276_v15 = vld [vmem:[%s363_s1 + $0x20] sm:$0xff]   ;;  %v279_v28 = vld [vmem:[%s363_s1 + $0x38] sm:$0xff]  }
   0x5   :  { %v30_v16 = vld [vmem:[%s366_s0] sm:$0xf] }
   0x6   :  { %252 = vmatpush3.bf16.msra.mxu0 %v273_v3  ;;  %v39_v12 = vrot.slane %v34_v8, %v38_v6  ;;  %v53_v14 = vrot.slane %v48_v11, %v38_v6  ;;  %v229_v30 = vld [vmem:[%s367_s4] ss:$0 sm:$0xff] }
   0x7   :  { %253 = vmatprep.subr.bf16.mxu0 %v280_v1  ;;  %v230_v32 = vld [vmem:[%s368_s5] ss:$0 sm:$0xff] }
   0x8   :  { %v218_v13 = vcombine.low %v39_v12, %v39_v12  ;;  %v219_v20 = vcombine.low %v53_v14, %v53_v14 }
   0xa   :  { %254 = vmatpush3.bf16.msra.mxu0 %v274_v5  ;;  %v44_v18 = vmul.bf16 %v218_v13, %v30_v16  ;;  %v45_v19 = vmul.bf16 %v218_v13, %v31_v17 }
   0xb   :  { %255 = vmatprep.subr.bf16.mxu0 %v280_v1 }
   0xc   :  { %v58_v22 = vadd.bf16 %v219_v20, %v44_v18  ;;  %v59_v23 = vadd.bf16 %v219_v20, %v45_v19 }
   0xe   :  { %256 = vmatpush3.bf16.msra.mxu0 %v275_v10  ;;  %v60_v26 = vmax.bf16 %v282_v25, %v58_v22  ;;  %v61_v27 = vmax.bf16 %v282_v25, %v59_v23 }
   0xf   :  { %257 = vmatprep.subr.bf16.mxu0 %v280_v1 }
  0x10   :  { %v220_v29 = vcombine.low %v60_v26, %v61_v27 }
  0x12   :  { %258 = vmatpush3.bf16.msra.mxu0 %v276_v15 }
  0x13   :  { %259 = vmatprep.subr.bf16.mxu0 %v280_v1 }
  0x16   :  { %260 = vmatpush3.bf16.msra.mxu0 %v277_v21 }
  0x17   :  { %261 = vmatprep.subr.bf16.mxu0 %v280_v1 }
  0x1a   :  { %262 = vmatpush3.bf16.msra.mxu0 %v278_v24 }
  0x1b   :  { %263 = vmatprep.subr.bf16.mxu0 %v280_v1 }
  0x1e   :  { %264 = vmatpush3.bf16.msra.mxu0 %v279_v28 }
  0x21   :  { %266 = vmatmul.mubr.bf16.vlgmr.msra.gmra.mrb[0].mxu0 %v220_v29 }
  0xf4   :  { %v168_v31 = vpop.f32.mrb[0].mxu0 }
  0xf5   :  { %v191_v33 = vmul.f32 %v229_v30, %v168_v31  ;;  %v267_v34 = vpop.f32.mrb[1].mxu0 }
  0xf6   :  { %v171_v35 = vpop.f32.mrb[2].mxu0 }
  0xf7   :  { %v200_v36 = vadd.f32 %v230_v32, %v191_v33  ;;  %v192_v37 = vmul.f32 %v229_v30, %v171_v35  ;;  %v268_v38 = vpop.f32.mrb[3].mxu0 }
  0xf9   :  { %v201_v39 = vadd.f32 %v230_v32, %v192_v37  ;;  %v202_v40 = vmax.f32 %v200_v36, 0.0 }
  0xfb   :  { %v203_v41 = vmax.f32 %v201_v39, 0.0 }
  0xfd   :  { %v238_v42 = vpack.c.bf16 %v203_v41, %v202_v40 }
  0xff   :  { %239 = vst [vmem:[%s369_s6] sm:$0xff] %v238_v42  }

// kernel: _lambda_.18
= control target key start
LH: loop header
LB: loop body
LE: loop exit
PB: predicated region body
PF: predicated region fallthrough
CT: control target
= control target key end

     0   :  { %s742_s9 = smov 0   ;;  %s744_s10 = smov 0   ;;  %s837_s0 = inlined_call_operand.vmem [shape: bf16[16,512], index: 0, kind: input, shape index: {}]   ;;  %s838_s1 = inlined_call_operand.vmem [shape: bf16[512,128], index: 1, kind: input, shape index: {}]   ;;  %s839_s2 = inlined_call_operand.vmem [shape: bf16[16,128], index: 2, kind: output, shape index: {}]  }
   0x1   :  { %s746_s11 = smov 0   ;;  %s748_s12 = smov 0  }
   0x2   :  { %s750_s13 = smov 0  }
   0x3 LB: > { %s24_s14 = sadd.s32 1, %s720_s12  ;;  %p47_p1 = scmp.ne.s32.totalorder %s712_s10, %s708_s9  ;;  %s724_s13 = sphi %s750_s13, %s12_s13   ;;  %s720_s12 = sphi %s748_s12, %s843_s12   ;;  %s716_s11 = sphi %s746_s11, %s842_s11   ;;  %s712_s10 = sphi %s744_s10, %s841_s10   ;;  %s708_s9 = sphi %s742_s9, %s840_s9  }
   0x4   : > { %p25_p0 = scmp.ge.s32.totalorder %s24_s14, 2  ;;  %p48_p2 = scmp.eq.s32.totalorder %s724_s13, 0 }
   0x5   : > { %s40_s16 = sadd.s32 1, %s712_s10  ;;  %p562_p5 = scmp.ge.s32.totalorder %s724_s13, 2 }
   0x6   : > { %s845_s14 = smov (%p25_p0, %s24_s14), 0  ;;  %p49_p3 = por %p48_p2, %p47_p1 }
   0x7   : > { %s36_s15 = ssub.s32 %s720_s12, %s845_s14  ;;  %129 = sbr.rel (%p562_p5) target bundleno = 21 (0x15), region = 16 }
   0x8   : > { %p38_p4 = scmp.eq.s32.totalorder %s36_s15, 0 }
   0xa   : > { %s777_s17 = scalar_select %p38_p4, %s712_s10, %s40_s16  }
   0xe   : > { %132 = sbr.rel (!%p49_p3) target bundleno = 21 (0x15), region = 20  ;;  %s134_s18 = sand.u32 (%p49_p3), 1, %s712_s10  }
   0xf   : > { %s596_s19 = sshll.u32 (%p49_p3), %s720_s12, 3  ;;  %s563_s20 = sshll.u32 (%p49_p3), %s134_s18, 4 }
  0x10   : > { %s142_s23 = scalar_lea.vmem (%p49_p3), %s837_s0, %s596_s19  ;;  %s136_s24 = scalar_lea.vmem (%p49_p3), [#allocation3], %s563_s20 }
  0x11   : > { %v172_v0 = vld [vmem:[%s142_s23] sm:$0xff] (%p49_p3)  ;;  %v174_v1 = vld [vmem:[%s142_s23 + $0x10] sm:$0xff] (%p49_p3) }
  0x12   : > { %173 = vst [vmem:[%s136_s24] sm:$0xff] (%p49_p3), %v172_v0  ;;  %175 = vst [vmem:[%s136_s24 + $0x8] sm:$0xff] (%p49_p3), %v174_v1 }
  0x15 PF: > { %p566_p6 = scmp.ge.s32.totalorder %s724_s13, 1  ;;  %p192_p7 = scmp.lt.s32.totalorder %s724_s13, 3 }
  0x17   : > { %p193_p8 = pnand %p566_p6, %p192_p7 }
  0x18   : > { %s199_s25 = sand.u32 (!%p193_p8), 1, %s708_s9   ;;  %s568_s26 = sshll.u32 (!%p193_p8), %s716_s11, 5 }
  0x19   : > { %196 = sbr.rel (%p193_p8) target bundleno = 302 (0x12e), region = 62  ;;  %s789_s27 = sshll.u32 (!%p193_p8), %s199_s25, 4 }
  0x1a   : > { %p234_p9 = scmp.lt.s32.totalorder (!%p193_p8), %s568_s26, 63  ;;  %s201_s4 = scalar_lea.vmem (!%p193_p8), [#allocation3], %s789_s27 }
  0x1b   : > { %p570_p10 = scmp.ne.s32.totalorder (!%p193_p8), %s716_s11, 0 }
  0x20   : > { %s847_s26 = smov (!%p234_p9, %s568_s26), 63  ;;  %255 = sbr.rel (%p570_p10) target bundleno = 39 (0x27), region = 70 }
  0x21   : > { %s569_s28 = sshll.u32 %s847_s26, 2  ;;  %v726_v2 = vmov (!%p570_p10), 0.0  }
  0x22   : > { %s794_s3 = scalar_lea.vmem %s838_s1, %s569_s28  ;;  %256 = vst [vmem:[#allocation2] sm:$0xff] (!%p570_p10), %v726_v2  ;;  %257 = vst [vmem:[#allocation2 + $0x8] sm:$0xff] (!%p570_p10), %v726_v2 }
  0x27 PF: > { %v667_v3 = vld [vmem:[%s794_s3 + $0x40] sm:$0xff]   ;;  %v669_v5 = vld [vmem:[%s794_s3 + $0x48] sm:$0xff]   ;;  %v671_v7 = vld [vmem:[%s794_s3 + $0x50] sm:$0xff]   ;;  %p589_p11 = scmp.ne.s32.totalorder %s716_s11, 1 }
  0x28   : > { %v668_v4 = vld [vmem:[%s794_s3] sm:$0xff]   ;;  %604 = vmatprep.subr.bf16.mxu0 %v667_v3  ;;  %v670_v6 = vld [vmem:[%s794_s3 + $0x8] sm:$0xff]   ;;  %v672_v8 = vld [vmem:[%s794_s3 + $0x10] sm:$0xff]  }
  0x29   : > { %605 = vmatpush3.bf16.msra.mxu0 %v668_v4  ;;  %v673_v9 = vld [vmem:[%s794_s3 + $0x58] sm:$0xff]   ;;  %v675_v11 = vld [vmem:[%s794_s3 + $0x60] sm:$0xff]   ;;  %v677_v13 = vld [vmem:[%s794_s3 + $0x68] sm:$0xff]  }
  0x2a   : > { %606 = vmatprep.subr.bf16.mxu0 %v669_v5  ;;  %v674_v10 = vld [vmem:[%s794_s3 + $0x18] sm:$0xff]   ;;  %v676_v12 = vld [vmem:[%s794_s3 + $0x20] sm:$0xff]   ;;  %v678_v15 = vld [vmem:[%s794_s3 + $0x28] sm:$0xff]  }
  0x2b   : > { %v685_v14 = vld [vmem:[%s201_s4 + $0x4] ss:$8 sps:$4 sm:$0xff]   ;;  %v683_v20 = vld [vmem:[%s201_s4] ss:$8 sps:$4 sm:$0xff]  }
  0x2c   : > { %432 = vmatprep.mubr.bf16.mxu0 %v685_v14  ;;  %v679_v16 = vld [vmem:[%s794_s3 + $0x70] sm:$0xff]   ;;  %v681_v18 = vld [vmem:[%s794_s3 + $0x78] sm:$0xff]   ;;  %v260_v22 = vld [vmem:[#allocation2] sm:$0xff] }
  0x2d   : > { %607 = vmatpush3.bf16.msra.mxu0 %v670_v6  ;;  %v680_v17 = vld [vmem:[%s794_s3 + $0x30] sm:$0xff]   ;;  %v682_v19 = vld [vmem:[%s794_s3 + $0x38] sm:$0xff]   ;;  %v261_v26 = vld [vmem:[#allocation2 + $0x8] sm:$0xff] }
  0x2e   : > { %608 = vmatprep.subr.bf16.mxu0 %v671_v7 }
  0x31   : > { %609 = vmatpush3.bf16.msra.mxu0 %v672_v8 }
  0x32   : > { %610 = vmatprep.subr.bf16.mxu0 %v673_v9 }
  0x35   : > { %611 = vmatpush3.bf16.msra.mxu0 %v674_v10 }
  0x36   : > { %612 = vmatprep.subr.bf16.mxu0 %v675_v11 }
  0x39   : > { %613 = vmatpush3.bf16.msra.mxu0 %v676_v12 }
  0x3a   : > { %614 = vmatprep.subr.bf16.mxu0 %v677_v13 }
  0x3d   : > { %615 = vmatpush3.bf16.msra.mxu0 %v678_v15 }
  0x3e   : > { %616 = vmatprep.subr.bf16.mxu0 %v679_v16 }
  0x41   : > { %617 = vmatpush3.bf16.msra.mxu0 %v680_v17 }
  0x42   : > { %618 = vmatprep.subr.bf16.mxu0 %v681_v18 }
  0x45   : > { %619 = vmatpush3.bf16.msra.mxu0 %v682_v19 }
  0x48   : > { %433 = vmatmul.mubr.bf16.vlgmr.msra.gmra.mrb[0].mxu0 %v683_v20 }
 0x11b   : > { %v620_v21 = vpop.f32.mrb[0].mxu0 }
 0x11c   : > { %v621_v23 = vpop.f32.mrb[1].mxu0 }
 0x11d   : > { %v622_v24 = vadd.f32 %v621_v23, %v620_v21  ;;  %v623_v25 = vpop.f32.mrb[2].mxu0  ;;  %448 = sbr.rel (%p589_p11) target bundleno = 302 (0x12e), region = 74 }
 0x11e   : > { %v624_v27 = vpop.f32.mrb[3].mxu0 }
 0x11f   : > { %v441_v28 = vadd.f32 %v622_v24, %v260_v22  ;;  %v625_v29 = vadd.f32 %v624_v27, %v623_v25 }
 0x121   : > { %443 = vst [vmem:[#allocation2] sm:$0xff] %v441_v28  ;;  %v442_v30 = vadd.f32 %v625_v29, %v261_v26 }
 0x123   : > { %444 = vst [vmem:[#allocation2 + $0x8] sm:$0xff] %v442_v30 }
 0x128   : > { %v449_v31 = vld [vmem:[#allocation2] sm:$0xff] }
 0x12a   : > { %v450_v32 = vld [vmem:[#allocation2 + $0x8] sm:$0xff] }
 0x12b   : > { %v602_v33 = vpack.c.bf16 %v450_v32, %v449_v31 }
 0x12d   : > { %603 = vst [vmem:[%s839_s2] sm:$0xff] %v602_v33  }
 0x12e PF: > { %s12_s13 = sadd.s32 1, %s724_s13   ;;  %s840_s9 = smov %s712_s10 }
 0x12f   : > { %p9_p12 = scmp.ge.s32.totalorder %s12_s13, 4   ;;  %s841_s10 = smov %s777_s17 }
 0x130   : > { %s842_s11 = smov %s720_s12  ;;  %s843_s12 = smov %s845_s14 }
 0x131   :  { %11 = sbr.rel (!%p9_p12) target bundleno = 3 (0x3), region = 112 }

// kernel: _lambda_.21
= control target key start
LH: loop header
LB: loop body
LE: loop exit
PB: predicated region body
PF: predicated region fallthrough
CT: control target
= control target key end

     0   :  { %8 = vsyncpa [#allocation3], 0  ;;  %s502_s0 = inlined_call_operand.vmem [shape: bf16[2,4,128], index: 0, kind: input, shape index: {}]   ;;  %s503_s1 = inlined_call_operand.vmem [shape: f32[1,1,128], index: 1, kind: input, shape index: {}]   ;;  %s504_s2 = inlined_call_operand.vmem [shape: f32[1,1,128], index: 2, kind: input, shape index: {}]   ;;  %s505_s3 = inlined_call_operand.hbm [shape: f32[2,1,128], index: 3, kind: output, shape index: {}]  }
   0x1   :  { %10 = vsyncpa [#allocation3 + $0x1], 0  ;;  %s396_s12 = smov 0   ;;  %s398_s13 = smov 0  }
   0x2   :  { %s400_s14 = smov 0   ;;  %s402_s15 = smov 0  }
   0x3 LB: > { %s417_s16 = sadd.s32 4294967295, %s373_s15   ;;  %s262_s17 = sadd.s32 4294967294, %s373_s15   ;;  %s373_s15 = sphi %s402_s15, %s511_s15   ;;  %s369_s14 = sphi %s400_s14, %s510_s14   ;;  %s365_s13 = sphi %s398_s13, %s509_s13   ;;  %s361_s12 = sphi %s396_s12, %s508_s12  }
   0x4   : > { %s421_s18 = sadd.s32 1, %s373_s15   ;;  %s91_s19 = sadd.s32 1, %s369_s14 }
   0x5   : > { %s88_s20 = ssub.s32 %s373_s15, %s421_s18  ;;  %p101_p0 = scmp.ne.s32.totalorder %s369_s14, %s365_s13 }
   0x6   : > { %p89_p1 = scmp.eq.s32.totalorder %s88_s20, 0  ;;  %p102_p2 = scmp.eq.s32.totalorder %s417_s16, 1 }
   0x7   : > { %p107_p3 = scmp.ne.s32.totalorder %s365_s13, %s361_s12  ;;  %p108_p4 = scmp.eq.s32.totalorder %s262_s17, 1 }
   0x8   : > { %s432_s21 = scalar_select %p89_p1, %s369_s14, %s91_s19  }
   0x9   : > { %p434_p5 = por %p102_p2, %p101_p0  ;;  %p438_p6 = por %p108_p4, %p107_p3 }
   0xa   : > { %p265_p7 = scmp.ge.s32.totalorder %s373_s15, 1  ;;  %p139_p8 = scmp.lt.s32.totalorder %s373_s15, 3 }
   0xc   : > { %p140_p9 = pnand %p265_p7, %p139_p8 }
   0xd   : > { %p161_p10 = scmp.lt.s32.totalorder (!%p140_p9), %s417_s16, 1  ;;  %v267_v1 = vld [vmem:[%s503_s1] ss:$0 sm:$0xff] (!%p140_p9)  ;;  %vm184_vm0 = vcmask (!%p140_p9), 1043456   ;;  %s159_s6 = sand.u32 (!%p140_p9), 1, %s365_s13  }
   0xe   : > { %143 = sbr.rel (%p140_p9) target bundleno = 63 (0x3f), region = 32  ;;  %v268_v3 = vld [vmem:[%s504_s2] ss:$0 sm:$0xff] (!%p140_p9)  ;;  %s160_s7 = scalar_lea.vmem (!%p140_p9), [#allocation2], %s159_s6 }
   0xf   : > { %s207_s8 = sshll.u32 (!%p140_p9), %s160_s7, 4  ;;  %s269_s9 = sshll.u32 (!%p140_p9), %s417_s16, 4  ;;  %s457_s8 = int_to_ptr.vmem [resolvable:$true] %s207_s8 }
  0x10   : > { %s462_s17 = scalar_lea.hbm (!%p140_p9), %s505_s3, %s269_s9  ;;  %s195_s19 = scalar_lea.sflag (!%p140_p9), [#allocation3], %s159_s6 }
  0x11   : > { %s311_s20 = scalar_lea.vmem (!%p140_p9), %s457_s8, 16 }
  0x12   : > { %p312_p11 = scmp.ne.s32.totalorder (!%p140_p9), %s457_s8, %s311_s20 }
  0x14   : > { %p313_p12 = pnand (!%p140_p9), %p312_p11, %p434_p5 }
  0x15   : > { %s162_s24 = scalar_select %p161_p10, %s417_s16, 1 }
  0x16   : > { %p314_p13 = pneg %p313_p12  ;;  %s375_s16 = smov [#allocation2]  }
  0x17   : > { %s266_s25 = sshll.u32 %s162_s24, 1  ;;  %s315_s24 = sshll.u32 %s375_s16, 4  ;;  %s316_s24 = int_to_ptr.vmem [resolvable:$false] %s315_s24 }
  0x18   : > { %s164_s28 = scalar_lea.vmem %s502_s0, %s266_s25  ;;  %s317_s25 = scalar_lea.vmem %s316_s24, 32 }
  0x19   : > { %v165_v0 = vld [vmem:[%s164_s28] sm:$0x3]  ;;  %p318_p0 = scmp.lt.s32.totalorder %s457_s8, %s316_s24  ;;  %p319_p1 = scmp.lt.s32.totalorder %s317_s25, %s311_s20 }
  0x1a   : > { %v166_v2 = vunpack.c.l.bf16 %v165_v0 }
  0x1b   : > { %p320_p2 = por %p319_p1, %p318_p0 }
  0x1c   : > { %v174_v4 = vmul.f32 %v267_v1, %v166_v2 }
  0x1d   : > { %p321_p3 = pnand %p320_p2, %p314_p13 }
  0x1e   : > { %v182_v5 = vadd.f32 %v268_v3, %v174_v4 }
  0x20   : > { %v183_v6 = vmax.f32 %v182_v5, 0.0 }
  0x22   : > { %v185_v7 = vsel %vm184_vm0, %v183_v6, 0.0 }
  0x23   : > { %v186_v8 = vrot.slane %v185_v7, 4 }
  0x25   : > { %v187_v9 = vadd.f32 %v186_v8, %v185_v7 }
  0x27   : > { %v188_v10 = vrot.slane %v187_v9, 2 }
  0x29   : > { %v189_v11 = vadd.f32 %v188_v10, %v187_v9 }
  0x2b   : > { %v190_v12 = vrot.slane %v189_v11, 1 }
  0x2d   : > { %v191_v13 = vadd.f32 %v190_v12, %v189_v11 }
  0x2f   : > { %v192_v14 = vmul.f32 0.25, %v191_v13 }
  0x31   : > { %193 = vst [vmem:[%s160_s7] sm:$0x1] %v192_v14 }
  0x32   : > { %324 = shalt.err (!%p321_p3)
}
  0x33   : > { %s325_s26 = scalar_lea.hbm %s462_s17, 16  ;;  %s329_s29 = scalar_lea.hbm %s505_s3, 32 }
  0x34   : > { %p326_p4 = scmp.ne.s32.totalorder %s462_s17, %s325_s26  ;;  %p330_p9 = scmp.lt.u32.totalorder %s462_s17, %s505_s3 }
  0x35   : > { %p331_p10 = scmp.lt.u32.totalorder %s329_s29, %s325_s26  ;;  %p333_p12 = scmp.lt.u32.totalorder %s325_s26, %s462_s17 }
  0x36   : > { %p327_p7 = pnand %p326_p4, %p434_p5 }
  0x37   : > { %p332_p11 = por %p331_p10, %p330_p9 }
  0x38   : > { %p328_p8 = pneg %p327_p7 }
  0x39   : > { %p334_p13 = por %p333_p12, %p332_p11 }
  0x3b   : > { %p335_p0 = pnand %p334_p13, %p328_p8 }
  0x3d   : > { %338 = shalt.err (!%p335_p0)
}
  0x3e   : > { %272 = dma.vmem_to_hbm [thread:$0]  (%p434_p5), %s457_s8, 16, %s462_s17, %s195_s19  }
  0x3f PF: > { %p278_p1 = scmp.ge.s32.totalorder %s373_s15, 2  ;;  %s219_s5 = sand.u32 1, %s361_s12  }
  0x40   : > { %s220_s6 = scalar_lea.sflag [#allocation3], %s219_s5 }
  0x41   : > { %p275_p2 = pnand %p278_p1, %p438_p6 }
  0x43   : > { %356 = dma.done.wait (!%p275_p2), %s220_s6, 16  }
  0x44   : > { %358 = vsyncadd (!%p275_p2), %s220_s6, 4294967280  ;;  %p13_p3 = scmp.ge.s32.totalorder %s421_s18, 4   ;;  %s508_s12 = smov %s365_s13 }
  0x45   : > { %s509_s13 = smov %s369_s14  ;;  %s510_s14 = smov %s432_s21 }
  0x46   : > { %s511_s15 = smov %s421_s18  ;;  %15 = sbr.rel (!%p13_p3) target bundleno = 3 (0x3), region = 67 }
  0x4d   :  { %224 = vsyncpa [#allocation3], 1 }
  0x4e   :  { %226 = vsyncpa [#allocation3 + $0x1], 1 }

</bundles_post_ra>
